<compile_context>
chip_gen: v7x
topology: tpu7x:2x2x1
jax: 0.10.0
libtpu: 0.0.40
codegen_flags: <defaults>
</compile_context>

<pallas_src>
import jax
import jax.numpy as jnp
from jax.experimental import pallas as pl
from jax.experimental.pallas import tpu as pltpu

# Layer sizes from the module definition.
LAYER_DIMS = [784, 256, 128, 64, 32, 16, 32, 64, 128, 256, 784]
N_LAYERS = len(LAYER_DIMS) - 1
F_PAD = 896  # 7 * 128 — lane-dense padding of the 784-wide input/output
# Dims as seen inside the kernel (only the first input / last output are padded).
PADDED_DIMS = [F_PAD] + LAYER_DIMS[1:-1] + [F_PAD]


def _round_up(n, m):
    return (n + m - 1) // m * m


def _ae_kernel(x_ref, bias_ref, *refs):
    """Fused 10 x (matmul + bias + ReLU) on one batch tile.

    x_ref:    (TB, 896) f32 batch tile
    bias_ref: (10, 896) f32 packed biases (row i = layer-i bias, zero padded)
    refs:     w1..w10 (bf16, [in, out]) followed by the output ref
    """
    out_ref = refs[-1]
    w_refs = refs[:-1]

    h = x_ref[...]                                        # f32 activations
    for i, w_ref in enumerate(w_refs):
        w = w_ref[...]                                    # bf16 [in, out]
        out_dim = PADDED_DIMS[i + 1]
        b = bias_ref[i:i + 1, :out_dim]                   # (1, out) f32
        # bf16 x bf16 -> f32 accumulate on the MXU.
        h = jnp.dot(h.astype(jnp.bfloat16), w,
                    preferred_element_type=jnp.float32)
        h = jnp.maximum(h + b, 0.0)                       # f32 bias + ReLU
    out_ref[...] = h.astype(out_ref.dtype)


@jax.jit
def autoencoder_linear_forward(x, params):
    """x: [B, 784] float32.  params: flat list [w1, b1, ..., w10, b10] with
    w_i of shape [in, out] and b_i of shape [1, out] (so h @ W + b matches
    PyTorch's x @ W.T + b)."""
    B = x.shape[0]

    # ---- batch tiling (TB a multiple of 8; scales to large B) --------------
    TB = min(512, _round_up(B, 8))
    B_pad = _round_up(B, TB)
    num_tiles = B_pad // TB

    # ---- pad features 784 -> 896, cast weights to bf16, pack biases --------
    x_p = jnp.pad(x, ((0, B_pad - B), (0, F_PAD - LAYER_DIMS[0])))

    weights = []
    bias_rows = []
    for i in range(N_LAYERS):
        w = params[2 * i]
        b = params[2 * i + 1].reshape(1, -1)
        if i == 0:                                        # pad input features
            w = jnp.pad(w, ((0, F_PAD - LAYER_DIMS[0]), (0, 0)))
        if i == N_LAYERS - 1:                             # pad output features
            w = jnp.pad(w, ((0, 0), (0, F_PAD - LAYER_DIMS[-1])))
            b = jnp.pad(b, ((0, 0), (0, F_PAD - LAYER_DIMS[-1])))
        weights.append(w.astype(jnp.bfloat16))
        bias_rows.append(jnp.pad(b, ((0, 0), (0, F_PAD - b.shape[1]))))
    bias_pack = jnp.concatenate(bias_rows, axis=0).astype(jnp.float32)  # (10, 896)

    # ---- block specs: x/out tiled over batch, params VMEM-resident ---------
    in_specs = [pl.BlockSpec((TB, F_PAD), lambda i: (i, 0)),        # x tile
                pl.BlockSpec(bias_pack.shape, lambda i: (0, 0))]    # biases
    for w in weights:
        in_specs.append(pl.BlockSpec(w.shape, lambda i: (0, 0)))    # weights
    out_spec = pl.BlockSpec((TB, F_PAD), lambda i: (i, 0))

    flops = 2 * B_pad * sum(PADDED_DIMS[i] * PADDED_DIMS[i + 1]
                            for i in range(N_LAYERS))
    bytes_accessed = (x_p.size * 4 + B_pad * F_PAD * 4
                      + bias_pack.size * 4
                      + sum(w.size * 2 for w in weights))

    out = pl.pallas_call(
        _ae_kernel,
        grid=(num_tiles,),
        in_specs=in_specs,
        out_specs=out_spec,
        out_shape=jax.ShapeDtypeStruct((B_pad, F_PAD), x.dtype),
        compiler_params=pltpu.CompilerParams(
            dimension_semantics=("parallel",)),
        cost_estimate=pl.CostEstimate(flops=flops,
                                      transcendentals=0,
                                      bytes_accessed=bytes_accessed),
    )(x_p, bias_pack, *weights)

    return out[:B, :LAYER_DIMS[-1]]


def init_params(key):
    """Deterministic init mirroring nn.Linear (uniform +/- 1/sqrt(fan_in))."""
    params = []
    for i in range(N_LAYERS):
        fan_in, fan_out = LAYER_DIMS[i], LAYER_DIMS[i + 1]
        key, kw, kb = jax.random.split(key, 3)
        bound = 1.0 / jnp.sqrt(fan_in)
        w = jax.random.uniform(kw, (fan_in, fan_out), jnp.float32, -bound, bound)
        b = jax.random.uniform(kb, (1, fan_out), jnp.float32, -bound, bound)
        params.extend([w, b])
    return params


def reference_forward(x, params):
    h = x
    for i in range(N_LAYERS):
        h = jnp.maximum(h @ params[2 * i] + params[2 * i + 1], 0.0)
    return h


if __name__ == "__main__":
    key = jax.random.PRNGKey(0)
    key, kx = jax.random.split(key)

    B = 8
    x = jax.random.normal(kx, (B, 784), dtype=jnp.float32)
    params = init_params(key)

    out = autoencoder_linear_forward(x, params)
    out = jax.block_until_ready(out)

    ref = reference_forward(x, params)  # f32 reference
    assert out.shape == (B, 784)
    # bf16 matmul inputs -> loosen tolerance vs the f32 reference.
    assert jnp.allclose(out, ref, atol=5e-2, rtol=5e-2), (
        float(jnp.max(jnp.abs(out - ref))))

    print("KERNEL_OK")
</pallas_src>

<mosaic_0001>
module attributes {stable_mosaic.version = 11 : i64} {
  func.func @_ae_kernel(%arg0: i32, %arg1: memref<8x896xf32, #tpu.memory_space<vmem>>, %arg2: memref<10x896xf32, #tpu.memory_space<vmem>>, %arg3: memref<896x256xbf16, #tpu.memory_space<vmem>>, %arg4: memref<256x128xbf16, #tpu.memory_space<vmem>>, %arg5: memref<128x64xbf16, #tpu.memory_space<vmem>>, %arg6: memref<64x32xbf16, #tpu.memory_space<vmem>>, %arg7: memref<32x16xbf16, #tpu.memory_space<vmem>>, %arg8: memref<16x32xbf16, #tpu.memory_space<vmem>>, %arg9: memref<32x64xbf16, #tpu.memory_space<vmem>>, %arg10: memref<64x128xbf16, #tpu.memory_space<vmem>>, %arg11: memref<128x256xbf16, #tpu.memory_space<vmem>>, %arg12: memref<256x896xbf16, #tpu.memory_space<vmem>>, %arg13: memref<8x896xf32, #tpu.memory_space<vmem>>) attributes {dimension_semantics = [#tpu.dimension_semantics<parallel>], iteration_bounds = array<i64: 1>, scalar_prefetch = 0 : i64, scratch_operands = 0 : i64, tpu.core_type = #tpu.core_type<tc>, window_params = [{transform_indices = @transform_0, window_bounds = array<i64: 8, 896>}, {pipeline_mode = #tpu.pipeline_mode<synchronous>, transform_indices = @transform_1, window_bounds = array<i64: 10, 896>}, {pipeline_mode = #tpu.pipeline_mode<synchronous>, transform_indices = @transform_2, window_bounds = array<i64: 896, 256>}, {pipeline_mode = #tpu.pipeline_mode<synchronous>, transform_indices = @transform_3, window_bounds = array<i64: 256, 128>}, {pipeline_mode = #tpu.pipeline_mode<synchronous>, transform_indices = @transform_4, window_bounds = array<i64: 128, 64>}, {pipeline_mode = #tpu.pipeline_mode<synchronous>, transform_indices = @transform_5, window_bounds = array<i64: 64, 32>}, {pipeline_mode = #tpu.pipeline_mode<synchronous>, transform_indices = @transform_6, window_bounds = array<i64: 32, 16>}, {pipeline_mode = #tpu.pipeline_mode<synchronous>, transform_indices = @transform_7, window_bounds = array<i64: 16, 32>}, {pipeline_mode = #tpu.pipeline_mode<synchronous>, transform_indices = @transform_8, window_bounds = array<i64: 32, 64>}, {pipeline_mode = #tpu.pipeline_mode<synchronous>, transform_indices = @transform_9, window_bounds = array<i64: 64, 128>}, {pipeline_mode = #tpu.pipeline_mode<synchronous>, transform_indices = @transform_10, window_bounds = array<i64: 128, 256>}, {pipeline_mode = #tpu.pipeline_mode<synchronous>, transform_indices = @transform_11, window_bounds = array<i64: 256, 896>}, {transform_indices = @transform_12, window_bounds = array<i64: 8, 896>}]} {
    %c0 = arith.constant 0 : index
    %c0_0 = arith.constant 0 : index
    %0 = vector.load %arg1[%c0, %c0_0] : memref<8x896xf32, #tpu.memory_space<vmem>>, vector<8x896xf32>
    %c0_1 = arith.constant 0 : index
    %c0_2 = arith.constant 0 : index
    %1 = vector.load %arg3[%c0_1, %c0_2] : memref<896x256xbf16, #tpu.memory_space<vmem>>, vector<896x256xbf16>
    %c0_3 = arith.constant 0 : index
    %c0_4 = arith.constant 0 : index
    %2 = vector.load %arg2[%c0_3, %c0_4] : memref<10x896xf32, #tpu.memory_space<vmem>>, vector<1x256xf32>
    %3 = arith.truncf %0 : vector<8x896xf32> to vector<8x896xbf16>
    %cst = arith.constant dense<0.000000e+00> : vector<8x256xf32>
    %4 = tpu.matmul %3, %1, %cst {dimension_numbers = #tpu.dot_dimension_numbers<[1], [0], [0], [1], [0, 0, 1, 1], [], []>} : vector<8x896xbf16>, vector<896x256xbf16>, vector<8x256xf32> -> vector<8x256xf32>
    %5 = vector.broadcast %2 : vector<1x256xf32> to vector<8x256xf32>
    %6 = arith.addf %4, %5 : vector<8x256xf32>
    %cst_5 = arith.constant 0.000000e+00 : f32
    %7 = vector.broadcast %cst_5 : f32 to vector<8x256xf32>
    %8 = arith.maximumf %6, %7 : vector<8x256xf32>
    %c0_6 = arith.constant 0 : index
    %c0_7 = arith.constant 0 : index
    %9 = vector.load %arg4[%c0_6, %c0_7] : memref<256x128xbf16, #tpu.memory_space<vmem>>, vector<256x128xbf16>
    %c1 = arith.constant 1 : index
    %c0_8 = arith.constant 0 : index
    %10 = vector.load %arg2[%c1, %c0_8] : memref<10x896xf32, #tpu.memory_space<vmem>>, vector<1x128xf32>
    %11 = arith.truncf %8 : vector<8x256xf32> to vector<8x256xbf16>
    %cst_9 = arith.constant dense<0.000000e+00> : vector<8x128xf32>
    %12 = tpu.matmul %11, %9, %cst_9 {dimension_numbers = #tpu.dot_dimension_numbers<[1], [0], [0], [1], [0, 0, 1, 1], [], []>} : vector<8x256xbf16>, vector<256x128xbf16>, vector<8x128xf32> -> vector<8x128xf32>
    %13 = vector.broadcast %10 : vector<1x128xf32> to vector<8x128xf32>
    %14 = arith.addf %12, %13 : vector<8x128xf32>
    %cst_10 = arith.constant 0.000000e+00 : f32
    %15 = vector.broadcast %cst_10 : f32 to vector<8x128xf32>
    %16 = arith.maximumf %14, %15 : vector<8x128xf32>
    %c0_11 = arith.constant 0 : index
    %c0_12 = arith.constant 0 : index
    %17 = vector.load %arg5[%c0_11, %c0_12] : memref<128x64xbf16, #tpu.memory_space<vmem>>, vector<128x64xbf16>
    %c2 = arith.constant 2 : index
    %c0_13 = arith.constant 0 : index
    %18 = vector.load %arg2[%c2, %c0_13] : memref<10x896xf32, #tpu.memory_space<vmem>>, vector<1x64xf32>
    %19 = arith.truncf %16 : vector<8x128xf32> to vector<8x128xbf16>
    %cst_14 = arith.constant dense<0.000000e+00> : vector<8x64xf32>
    %20 = tpu.matmul %19, %17, %cst_14 {dimension_numbers = #tpu.dot_dimension_numbers<[1], [0], [0], [1], [0, 0, 1, 1], [], []>} : vector<8x128xbf16>, vector<128x64xbf16>, vector<8x64xf32> -> vector<8x64xf32>
    %21 = vector.broadcast %18 : vector<1x64xf32> to vector<8x64xf32>
    %22 = arith.addf %20, %21 : vector<8x64xf32>
    %cst_15 = arith.constant 0.000000e+00 : f32
    %23 = vector.broadcast %cst_15 : f32 to vector<8x64xf32>
    %24 = arith.maximumf %22, %23 : vector<8x64xf32>
    %c0_16 = arith.constant 0 : index
    %c0_17 = arith.constant 0 : index
    %25 = vector.load %arg6[%c0_16, %c0_17] : memref<64x32xbf16, #tpu.memory_space<vmem>>, vector<64x32xbf16>
    %c3 = arith.constant 3 : index
    %c0_18 = arith.constant 0 : index
    %26 = vector.load %arg2[%c3, %c0_18] : memref<10x896xf32, #tpu.memory_space<vmem>>, vector<1x32xf32>
    %27 = arith.truncf %24 : vector<8x64xf32> to vector<8x64xbf16>
    %cst_19 = arith.constant dense<0.000000e+00> : vector<8x32xf32>
    %28 = tpu.matmul %27, %25, %cst_19 {dimension_numbers = #tpu.dot_dimension_numbers<[1], [0], [0], [1], [0, 0, 1, 1], [], []>} : vector<8x64xbf16>, vector<64x32xbf16>, vector<8x32xf32> -> vector<8x32xf32>
    %29 = vector.broadcast %26 : vector<1x32xf32> to vector<8x32xf32>
    %30 = arith.addf %28, %29 : vector<8x32xf32>
    %cst_20 = arith.constant 0.000000e+00 : f32
    %31 = vector.broadcast %cst_20 : f32 to vector<8x32xf32>
    %32 = arith.maximumf %30, %31 : vector<8x32xf32>
    %c0_21 = arith.constant 0 : index
    %c0_22 = arith.constant 0 : index
    %33 = vector.load %arg7[%c0_21, %c0_22] : memref<32x16xbf16, #tpu.memory_space<vmem>>, vector<32x16xbf16>
    %c4 = arith.constant 4 : index
    %c0_23 = arith.constant 0 : index
    %34 = vector.load %arg2[%c4, %c0_23] : memref<10x896xf32, #tpu.memory_space<vmem>>, vector<1x16xf32>
    %35 = arith.truncf %32 : vector<8x32xf32> to vector<8x32xbf16>
    %cst_24 = arith.constant dense<0.000000e+00> : vector<8x16xf32>
    %36 = tpu.matmul %35, %33, %cst_24 {dimension_numbers = #tpu.dot_dimension_numbers<[1], [0], [0], [1], [0, 0, 1, 1], [], []>} : vector<8x32xbf16>, vector<32x16xbf16>, vector<8x16xf32> -> vector<8x16xf32>
    %37 = vector.broadcast %34 : vector<1x16xf32> to vector<8x16xf32>
    %38 = arith.addf %36, %37 : vector<8x16xf32>
    %cst_25 = arith.constant 0.000000e+00 : f32
    %39 = vector.broadcast %cst_25 : f32 to vector<8x16xf32>
    %40 = arith.maximumf %38, %39 : vector<8x16xf32>
    %c0_26 = arith.constant 0 : index
    %c0_27 = arith.constant 0 : index
    %41 = vector.load %arg8[%c0_26, %c0_27] : memref<16x32xbf16, #tpu.memory_space<vmem>>, vector<16x32xbf16>
    %c5 = arith.constant 5 : index
    %c0_28 = arith.constant 0 : index
    %42 = vector.load %arg2[%c5, %c0_28] : memref<10x896xf32, #tpu.memory_space<vmem>>, vector<1x32xf32>
    %43 = arith.truncf %40 : vector<8x16xf32> to vector<8x16xbf16>
    %cst_29 = arith.constant dense<0.000000e+00> : vector<8x32xf32>
    %44 = tpu.matmul %43, %41, %cst_29 {dimension_numbers = #tpu.dot_dimension_numbers<[1], [0], [0], [1], [0, 0, 1, 1], [], []>} : vector<8x16xbf16>, vector<16x32xbf16>, vector<8x32xf32> -> vector<8x32xf32>
    %45 = vector.broadcast %42 : vector<1x32xf32> to vector<8x32xf32>
    %46 = arith.addf %44, %45 : vector<8x32xf32>
    %cst_30 = arith.constant 0.000000e+00 : f32
    %47 = vector.broadcast %cst_30 : f32 to vector<8x32xf32>
    %48 = arith.maximumf %46, %47 : vector<8x32xf32>
    %c0_31 = arith.constant 0 : index
    %c0_32 = arith.constant 0 : index
    %49 = vector.load %arg9[%c0_31, %c0_32] : memref<32x64xbf16, #tpu.memory_space<vmem>>, vector<32x64xbf16>
    %c6 = arith.constant 6 : index
    %c0_33 = arith.constant 0 : index
    %50 = vector.load %arg2[%c6, %c0_33] : memref<10x896xf32, #tpu.memory_space<vmem>>, vector<1x64xf32>
    %51 = arith.truncf %48 : vector<8x32xf32> to vector<8x32xbf16>
    %cst_34 = arith.constant dense<0.000000e+00> : vector<8x64xf32>
    %52 = tpu.matmul %51, %49, %cst_34 {dimension_numbers = #tpu.dot_dimension_numbers<[1], [0], [0], [1], [0, 0, 1, 1], [], []>} : vector<8x32xbf16>, vector<32x64xbf16>, vector<8x64xf32> -> vector<8x64xf32>
    %53 = vector.broadcast %50 : vector<1x64xf32> to vector<8x64xf32>
    %54 = arith.addf %52, %53 : vector<8x64xf32>
    %cst_35 = arith.constant 0.000000e+00 : f32
    %55 = vector.broadcast %cst_35 : f32 to vector<8x64xf32>
    %56 = arith.maximumf %54, %55 : vector<8x64xf32>
    %c0_36 = arith.constant 0 : index
    %c0_37 = arith.constant 0 : index
    %57 = vector.load %arg10[%c0_36, %c0_37] : memref<64x128xbf16, #tpu.memory_space<vmem>>, vector<64x128xbf16>
    %c7 = arith.constant 7 : index
    %c0_38 = arith.constant 0 : index
    %58 = vector.load %arg2[%c7, %c0_38] : memref<10x896xf32, #tpu.memory_space<vmem>>, vector<1x128xf32>
    %59 = arith.truncf %56 : vector<8x64xf32> to vector<8x64xbf16>
    %cst_39 = arith.constant dense<0.000000e+00> : vector<8x128xf32>
    %60 = tpu.matmul %59, %57, %cst_39 {dimension_numbers = #tpu.dot_dimension_numbers<[1], [0], [0], [1], [0, 0, 1, 1], [], []>} : vector<8x64xbf16>, vector<64x128xbf16>, vector<8x128xf32> -> vector<8x128xf32>
    %61 = vector.broadcast %58 : vector<1x128xf32> to vector<8x128xf32>
    %62 = arith.addf %60, %61 : vector<8x128xf32>
    %cst_40 = arith.constant 0.000000e+00 : f32
    %63 = vector.broadcast %cst_40 : f32 to vector<8x128xf32>
    %64 = arith.maximumf %62, %63 : vector<8x128xf32>
    %c0_41 = arith.constant 0 : index
    %c0_42 = arith.constant 0 : index
    %65 = vector.load %arg11[%c0_41, %c0_42] : memref<128x256xbf16, #tpu.memory_space<vmem>>, vector<128x256xbf16>
    %c8 = arith.constant 8 : index
    %c0_43 = arith.constant 0 : index
    %66 = vector.load %arg2[%c8, %c0_43] : memref<10x896xf32, #tpu.memory_space<vmem>>, vector<1x256xf32>
    %67 = arith.truncf %64 : vector<8x128xf32> to vector<8x128xbf16>
    %cst_44 = arith.constant dense<0.000000e+00> : vector<8x256xf32>
    %68 = tpu.matmul %67, %65, %cst_44 {dimension_numbers = #tpu.dot_dimension_numbers<[1], [0], [0], [1], [0, 0, 1, 1], [], []>} : vector<8x128xbf16>, vector<128x256xbf16>, vector<8x256xf32> -> vector<8x256xf32>
    %69 = vector.broadcast %66 : vector<1x256xf32> to vector<8x256xf32>
    %70 = arith.addf %68, %69 : vector<8x256xf32>
    %cst_45 = arith.constant 0.000000e+00 : f32
    %71 = vector.broadcast %cst_45 : f32 to vector<8x256xf32>
    %72 = arith.maximumf %70, %71 : vector<8x256xf32>
    %c0_46 = arith.constant 0 : index
    %c0_47 = arith.constant 0 : index
    %73 = vector.load %arg12[%c0_46, %c0_47] : memref<256x896xbf16, #tpu.memory_space<vmem>>, vector<256x896xbf16>
    %c9 = arith.constant 9 : index
    %c0_48 = arith.constant 0 : index
    %74 = vector.load %arg2[%c9, %c0_48] : memref<10x896xf32, #tpu.memory_space<vmem>>, vector<1x896xf32>
    %75 = arith.truncf %72 : vector<8x256xf32> to vector<8x256xbf16>
    %cst_49 = arith.constant dense<0.000000e+00> : vector<8x896xf32>
    %76 = tpu.matmul %75, %73, %cst_49 {dimension_numbers = #tpu.dot_dimension_numbers<[1], [0], [0], [1], [0, 0, 1, 1], [], []>} : vector<8x256xbf16>, vector<256x896xbf16>, vector<8x896xf32> -> vector<8x896xf32>
    %77 = vector.broadcast %74 : vector<1x896xf32> to vector<8x896xf32>
    %78 = arith.addf %76, %77 : vector<8x896xf32>
    %cst_50 = arith.constant 0.000000e+00 : f32
    %79 = vector.broadcast %cst_50 : f32 to vector<8x896xf32>
    %80 = arith.maximumf %78, %79 : vector<8x896xf32>
    %c0_51 = arith.constant 0 : index
    %c0_52 = arith.constant 0 : index
    %81 = vector.load %arg13[%c0_51, %c0_52] : memref<8x896xf32, #tpu.memory_space<vmem>>, vector<8x896xf32>
    tpu.vector_store %arg13[%c0_51, %c0_52], %80 {strides = array<i32>} : memref<8x896xf32, #tpu.memory_space<vmem>>, vector<8x896xf32>,
    return
  }
  func.func @transform_0(%arg0: i32) -> (i32, i32) {
    %c0_i32 = arith.constant 0 : i32
    %c0_i32_0 = arith.constant 0 : i32
    return %arg0, %c0_i32 : i32, i32
  }
  func.func @transform_1(%arg0: i32) -> (i32, i32) {
    %c0_i32 = arith.constant 0 : i32
    %c0_i32_0 = arith.constant 0 : i32
    %c0_i32_1 = arith.constant 0 : i32
    return %c0_i32, %c0_i32_0 : i32, i32
  }
  func.func @transform_2(%arg0: i32) -> (i32, i32) {
    %c0_i32 = arith.constant 0 : i32
    %c0_i32_0 = arith.constant 0 : i32
    %c0_i32_1 = arith.constant 0 : i32
    return %c0_i32, %c0_i32_0 : i32, i32
  }
  func.func @transform_3(%arg0: i32) -> (i32, i32) {
    %c0_i32 = arith.constant 0 : i32
    %c0_i32_0 = arith.constant 0 : i32
    %c0_i32_1 = arith.constant 0 : i32
    return %c0_i32, %c0_i32_0 : i32, i32
  }
  func.func @transform_4(%arg0: i32) -> (i32, i32) {
    %c0_i32 = arith.constant 0 : i32
    %c0_i32_0 = arith.constant 0 : i32
    %c0_i32_1 = arith.constant 0 : i32
    return %c0_i32, %c0_i32_0 : i32, i32
  }
  func.func @transform_5(%arg0: i32) -> (i32, i32) {
    %c0_i32 = arith.constant 0 : i32
    %c0_i32_0 = arith.constant 0 : i32
    %c0_i32_1 = arith.constant 0 : i32
    return %c0_i32, %c0_i32_0 : i32, i32
  }
  func.func @transform_6(%arg0: i32) -> (i32, i32) {
    %c0_i32 = arith.constant 0 : i32
    %c0_i32_0 = arith.constant 0 : i32
    %c0_i32_1 = arith.constant 0 : i32
    return %c0_i32, %c0_i32_0 : i32, i32
  }
  func.func @transform_7(%arg0: i32) -> (i32, i32) {
    %c0_i32 = arith.constant 0 : i32
    %c0_i32_0 = arith.constant 0 : i32
    %c0_i32_1 = arith.constant 0 : i32
    return %c0_i32, %c0_i32_0 : i32, i32
  }
  func.func @transform_8(%arg0: i32) -> (i32, i32) {
    %c0_i32 = arith.constant 0 : i32
    %c0_i32_0 = arith.constant 0 : i32
    %c0_i32_1 = arith.constant 0 : i32
    return %c0_i32, %c0_i32_0 : i32, i32
  }
  func.func @transform_9(%arg0: i32) -> (i32, i32) {
    %c0_i32 = arith.constant 0 : i32
    %c0_i32_0 = arith.constant 0 : i32
    %c0_i32_1 = arith.constant 0 : i32
    return %c0_i32, %c0_i32_0 : i32, i32
  }
  func.func @transform_10(%arg0: i32) -> (i32, i32) {
    %c0_i32 = arith.constant 0 : i32
    %c0_i32_0 = arith.constant 0 : i32
    %c0_i32_1 = arith.constant 0 : i32
    return %c0_i32, %c0_i32_0 : i32, i32
  }
  func.func @transform_11(%arg0: i32) -> (i32, i32) {
    %c0_i32 = arith.constant 0 : i32
    %c0_i32_0 = arith.constant 0 : i32
    %c0_i32_1 = arith.constant 0 : i32
    return %c0_i32, %c0_i32_0 : i32, i32
  }
  func.func @transform_12(%arg0: i32) -> (i32, i32) {
    %c0_i32 = arith.constant 0 : i32
    %c0_i32_0 = arith.constant 0 : i32
    return %arg0, %c0_i32 : i32, i32
  }
}

</mosaic_0001>

<bundles_post_ra>
// kernel: autoencoder_linear_forward.1
= control target key start
LH: loop header
LB: loop body
LE: loop exit
PB: predicated region body
PF: predicated region fallthrough
CT: control target
= control target key end

     0   :  { %s4502_s0 = inlined_call_operand.vmem [shape: f32[8,896], index: 0, kind: input, shape index: {}]   ;;  %s4503_s1 = inlined_call_operand.vmem [shape: f32[10,896], index: 1, kind: input, shape index: {}]   ;;  %s4504_s2 = inlined_call_operand.vmem [shape: bf16[896,256], index: 2, kind: input, shape index: {}]   ;;  %s4505_s3 = inlined_call_operand.vmem [shape: bf16[256,128], index: 3, kind: input, shape index: {}]   ;;  %s4506_s4 = inlined_call_operand.vmem [shape: bf16[128,64], index: 4, kind: input, shape index: {}]   ;;  %s4507_s5 = inlined_call_operand.vmem [shape: bf16[64,32], index: 5, kind: input, shape index: {}]   ;;  %s4508_s6 = inlined_call_operand.vmem [shape: bf16[32,16], index: 6, kind: input, shape index: {}]   ;;  %s4509_s7 = inlined_call_operand.vmem [shape: bf16[16,32], index: 7, kind: input, shape index: {}]   ;;  %s4510_s8 = inlined_call_operand.vmem [shape: bf16[32,64], index: 8, kind: input, shape index: {}]   ;;  %s4511_s9 = inlined_call_operand.vmem [shape: bf16[64,128], index: 9, kind: input, shape index: {}]   ;;  %s4512_s10 = inlined_call_operand.vmem [shape: bf16[128,256], index: 10, kind: input, shape index: {}]   ;;  %s4513_s11 = inlined_call_operand.vmem [shape: bf16[256,896], index: 11, kind: input, shape index: {}]   ;;  %s4514_s12 = inlined_call_operand.hbm [shape: f32[8,896], index: 12, kind: output, shape index: {}]  }
   0x1   :  { %v3053_v0 = vld [vmem:[%s4504_s2 + $0x4] ss:$8 sps:$4 sm:$0xff]   ;;  %v3055_v1 = vld [vmem:[%s4504_s2] ss:$8 sps:$4 sm:$0xff]   ;;  %v3056_v2 = vld [vmem:[%s4504_s2 + $0x14] ss:$8 sps:$4 sm:$0xff]  }
   0x2   :  { %741 = vmatprep.subr.bf16.mxu0 %v3053_v0  ;;  %v3058_v3 = vld [vmem:[%s4504_s2 + $0x10] ss:$8 sps:$4 sm:$0xff]   ;;  %v3059_v4 = vld [vmem:[%s4504_s2 + $0x24] ss:$8 sps:$4 sm:$0xff]   ;;  %v3061_v5 = vld [vmem:[%s4504_s2 + $0x20] ss:$8 sps:$4 sm:$0xff]  }
   0x3   :  { %742 = vmatpush1.bf16.msra.mxu0 %v3055_v1  ;;  %v3062_v6 = vld [vmem:[%s4504_s2 + $0x34] ss:$8 sps:$4 sm:$0xff]   ;;  %v3064_v7 = vld [vmem:[%s4504_s2 + $0x30] ss:$8 sps:$4 sm:$0xff]   ;;  %v3065_v8 = vld [vmem:[%s4504_s2 + $0x44] ss:$8 sps:$4 sm:$0xff]  }
   0x4   :  { %743 = vmatprep.subr.bf16.mxu0 %v3056_v2  ;;  %v3067_v9 = vld [vmem:[%s4504_s2 + $0x40] ss:$8 sps:$4 sm:$0xff]   ;;  %v3068_v10 = vld [vmem:[%s4504_s2 + $0x54] ss:$8 sps:$4 sm:$0xff]   ;;  %v3070_v11 = vld [vmem:[%s4504_s2 + $0x50] ss:$8 sps:$4 sm:$0xff]  }
   0x5   :  { %v3071_v12 = vld [vmem:[%s4504_s2 + $0x64] ss:$8 sps:$4 sm:$0xff]   ;;  %v3073_v15 = vld [vmem:[%s4504_s2 + $0x60] ss:$8 sps:$4 sm:$0xff]   ;;  %v3074_v16 = vld [vmem:[%s4504_s2 + $0x74] ss:$8 sps:$4 sm:$0xff]  }
   0x6   :  { %v44_v13 = vld [vmem:[%s4502_s0 + $0x8] sm:$0xff]  ;;  %v3076_v17 = vld [vmem:[%s4504_s2 + $0x70] ss:$8 sps:$4 sm:$0xff]   ;;  %v3080_v20 = vld [vmem:[%s4504_s2 + $0x94] ss:$8 sps:$4 sm:$0xff]  }
   0x7   :  { %744 = vmatpush1.bf16.msra.mxu0 %v3058_v3  ;;  %v164_v14 = vpack.c.bf16 %v44_v13, %v44_v13  ;;  %v3077_v18 = vld [vmem:[%s4504_s2 + $0x84] ss:$8 sps:$4 sm:$0xff]   ;;  %v3079_v19 = vld [vmem:[%s4504_s2 + $0x80] ss:$8 sps:$4 sm:$0xff]   ;;  %v3082_v21 = vld [vmem:[%s4504_s2 + $0x90] ss:$8 sps:$4 sm:$0xff]  }
   0x8   :  { %745 = vmatprep.subr.bf16.mxu0 %v3059_v4  ;;  %v3083_v22 = vld [vmem:[%s4504_s2 + $0xa4] ss:$8 sps:$4 sm:$0xff]   ;;  %v3085_v23 = vld [vmem:[%s4504_s2 + $0xa0] ss:$8 sps:$4 sm:$0xff]   ;;  %v3086_v24 = vld [vmem:[%s4504_s2 + $0xb4] ss:$8 sps:$4 sm:$0xff]  }
   0x9   :  { %773 = vmatprep.mubr.bf16.mxu0 %v164_v14  ;;  %v3088_v25 = vld [vmem:[%s4504_s2 + $0xb0] ss:$8 sps:$4 sm:$0xff]   ;;  %v3089_v26 = vld [vmem:[%s4504_s2 + $0xc4] ss:$8 sps:$4 sm:$0xff]   ;;  %v3091_v27 = vld [vmem:[%s4504_s2 + $0xc0] ss:$8 sps:$4 sm:$0xff]  }
   0xa   :  { %v3092_v28 = vld [vmem:[%s4504_s2 + $0xd4] ss:$8 sps:$4 sm:$0xff]   ;;  %v3094_v29 = vld [vmem:[%s4504_s2 + $0xd0] ss:$8 sps:$4 sm:$0xff]   ;;  %v3095_v30 = vld [vmem:[%s4504_s2 + $0xe4] ss:$8 sps:$4 sm:$0xff]  }
   0xb   :  { %746 = vmatpush1.bf16.msra.mxu0 %v3061_v5  ;;  %v3097_v31 = vld [vmem:[%s4504_s2 + $0xe0] ss:$8 sps:$4 sm:$0xff]   ;;  %v3098_v32 = vld [vmem:[%s4504_s2 + $0xf4] ss:$8 sps:$4 sm:$0xff]   ;;  %v3100_v33 = vld [vmem:[%s4504_s2 + $0xf0] ss:$8 sps:$4 sm:$0xff]  }
   0xc   :  { %747 = vmatprep.subr.bf16.mxu0 %v3062_v6  ;;  %v3103_v34 = vld [vmem:[%s4504_s2 + $0x104] ss:$8 sps:$4 sm:$0xff]   ;;  %v46_v36 = vld [vmem:[%s4502_s0 + $0x18] sm:$0xff]  ;;  %v3101_v38 = vld [vmem:[%s4504_s2 + $0x100] ss:$8 sps:$4 sm:$0xff]  }
   0xd   :  { %v43_v35 = vld [vmem:[%s4502_s0] sm:$0xff]  ;;  %v166_v39 = vpack.c.bf16 %v46_v36, %v46_v36  ;;  %v3106_v40 = vld [vmem:[%s4504_s2 + $0x114] ss:$8 sps:$4 sm:$0xff]   ;;  %v3104_v41 = vld [vmem:[%s4504_s2 + $0x110] ss:$8 sps:$4 sm:$0xff]  }
   0xe   :  { %v163_v37 = vpack.c.bf16 %v43_v35, %v43_v35  ;;  %v3109_v42 = vld [vmem:[%s4504_s2 + $0x124] ss:$8 sps:$4 sm:$0xff]   ;;  %v3107_v43 = vld [vmem:[%s4504_s2 + $0x120] ss:$8 sps:$4 sm:$0xff]   ;;  %v3112_v44 = vld [vmem:[%s4504_s2 + $0x134] ss:$8 sps:$4 sm:$0xff]  }
   0xf   :  { %748 = vmatpush1.bf16.msra.mxu0 %v3064_v7  ;;  %v3110_v45 = vld [vmem:[%s4504_s2 + $0x130] ss:$8 sps:$4 sm:$0xff]   ;;  %v3115_v46 = vld [vmem:[%s4504_s2 + $0x144] ss:$8 sps:$4 sm:$0xff]   ;;  %v3113_v47 = vld [vmem:[%s4504_s2 + $0x140] ss:$8 sps:$4 sm:$0xff]  }
  0x10   :  { %749 = vmatprep.subr.bf16.mxu0 %v3065_v8  ;;  %v3118_v48 = vld [vmem:[%s4504_s2 + $0x154] ss:$8 sps:$4 sm:$0xff]   ;;  %v3116_v49 = vld [vmem:[%s4504_s2 + $0x150] ss:$8 sps:$4 sm:$0xff]   ;;  %v3121_v50 = vld [vmem:[%s4504_s2 + $0x164] ss:$8 sps:$4 sm:$0xff]  }
  0x11   :  { %v3119_v51 = vld [vmem:[%s4504_s2 + $0x160] ss:$8 sps:$4 sm:$0xff]   ;;  %v3124_v52 = vld [vmem:[%s4504_s2 + $0x174] ss:$8 sps:$4 sm:$0xff]   ;;  %v3122_v53 = vld [vmem:[%s4504_s2 + $0x170] ss:$8 sps:$4 sm:$0xff]  }
  0x12   :  { %v3127_v54 = vld [vmem:[%s4504_s2 + $0x184] ss:$8 sps:$4 sm:$0xff]   ;;  %v3125_v55 = vld [vmem:[%s4504_s2 + $0x180] ss:$8 sps:$4 sm:$0xff]   ;;  %v3130_v56 = vld [vmem:[%s4504_s2 + $0x194] ss:$8 sps:$4 sm:$0xff]  }
  0x13   :  { %750 = vmatpush1.bf16.msra.mxu0 %v3067_v9  ;;  %v3221_v57 = vld [vmem:[%s4505_s3 + $0x40] sm:$0xff]   ;;  %v3223_v59 = vld [vmem:[%s4505_s3 + $0x48] sm:$0xff]   ;;  %v3128_v60 = vld [vmem:[%s4504_s2 + $0x190] ss:$8 sps:$4 sm:$0xff]  }
  0x14   :  { %751 = vmatprep.subr.bf16.mxu0 %v3068_v10  ;;  %v3222_v58 = vld [vmem:[%s4505_s3] sm:$0xff]   ;;  %2898 = vmatprep.subr.bf16.mxu1 %v3221_v57  ;;  %v3224_v63 = vld [vmem:[%s4505_s3 + $0x8] sm:$0xff]   ;;  %v3136_v0 = vld [vmem:[%s4504_s2 + $0x1b4] ss:$8 sps:$4 sm:$0xff]  }
  0x15   :  { %v3133_v61 = vld [vmem:[%s4504_s2 + $0x1a4] ss:$8 sps:$4 sm:$0xff]   ;;  %v3131_v62 = vld [vmem:[%s4504_s2 + $0x1a0] ss:$8 sps:$4 sm:$0xff]   ;;  %2899 = vmatpush3.bf16.msra.mxu1 %v3222_v58  ;;  %v3225_v1 = vld [vmem:[%s4505_s3 + $0x50] sm:$0xff]  }
  0x16   :  { %2900 = vmatprep.subr.bf16.mxu1 %v3223_v59  ;;  %v3226_v2 = vld [vmem:[%s4505_s3 + $0x10] sm:$0xff]   ;;  %v3227_v3 = vld [vmem:[%s4505_s3 + $0x58] sm:$0xff]   ;;  %v3139_v5 = vld [vmem:[%s4504_s2 + $0x1c4] ss:$8 sps:$4 sm:$0xff]  }
  0x17   :  { %752 = vmatpush1.bf16.msra.mxu0 %v3070_v11  ;;  %v3134_v4 = vld [vmem:[%s4504_s2 + $0x1b0] ss:$8 sps:$4 sm:$0xff]   ;;  %v3229_v7 = vld [vmem:[%s4505_s3 + $0x60] sm:$0xff]   ;;  %v3142_v9 = vld [vmem:[%s4504_s2 + $0x1d4] ss:$8 sps:$4 sm:$0xff]  }
  0x18   :  { %753 = vmatprep.subr.bf16.mxu0 %v3071_v12  ;;  %v3228_v6 = vld [vmem:[%s4505_s3 + $0x18] sm:$0xff]   ;;  %v3137_v8 = vld [vmem:[%s4504_s2 + $0x1c0] ss:$8 sps:$4 sm:$0xff]   ;;  %v3145_v13 = vld [vmem:[%s4504_s2 + $0x1e4] ss:$8 sps:$4 sm:$0xff]  }
  0x19   :  { %2901 = vmatpush3.bf16.msra.mxu1 %v3224_v63  ;;  %v3230_v10 = vld [vmem:[%s4505_s3 + $0x20] sm:$0xff]   ;;  %v3231_v11 = vld [vmem:[%s4505_s3 + $0x68] sm:$0xff]   ;;  %v3140_v12 = vld [vmem:[%s4504_s2 + $0x1d0] ss:$8 sps:$4 sm:$0xff]  }
  0x1a   :  { %2902 = vmatprep.subr.bf16.mxu1 %v3225_v1  ;;  %v3232_v14 = vld [vmem:[%s4505_s3 + $0x28] sm:$0xff]   ;;  %v3172_v36 = vld [vmem:[%s4504_s2 + $0x274] ss:$8 sps:$4 sm:$0xff]  }
  0x1b   :  { %754 = vmatpush1.bf16.msra.mxu0 %v3073_v15  ;;  %v3143_v15 = vld [vmem:[%s4504_s2 + $0x1e0] ss:$8 sps:$4 sm:$0xff]  }
  0x1c   :  { %755 = vmatprep.subr.bf16.mxu0 %v3074_v16  ;;  %v3148_v16 = vld [vmem:[%s4504_s2 + $0x1f4] ss:$8 sps:$4 sm:$0xff]   ;;  %v3167_v35 = vld [vmem:[%s4504_s2 + $0x260] ss:$8 sps:$4 sm:$0xff]  }
  0x1d   :  { %2903 = vmatpush3.bf16.msra.mxu1 %v3226_v2 }
  0x1e   :  { %2904 = vmatprep.subr.bf16.mxu1 %v3227_v3 }
  0x1f   :  { %756 = vmatpush1.bf16.msra.mxu0 %v3076_v17  ;;  %v3146_v17 = vld [vmem:[%s4504_s2 + $0x1f0] ss:$8 sps:$4 sm:$0xff]  }
  0x20   :  { %757 = vmatprep.subr.bf16.mxu0 %v3077_v18  ;;  %v45_v18 = vld [vmem:[%s4502_s0 + $0x10] sm:$0xff] }
  0x21   :  { %2905 = vmatpush3.bf16.msra.mxu1 %v3228_v6 }
  0x22   :  { %2906 = vmatprep.subr.bf16.mxu1 %v3229_v7 }
  0x23   :  { %758 = vmatpush1.bf16.msra.mxu0 %v3079_v19  ;;  %v3151_v19 = vld [vmem:[%s4504_s2 + $0x204] ss:$8 sps:$4 sm:$0xff]  }
  0x24   :  { %759 = vmatprep.subr.bf16.mxu0 %v3080_v20  ;;  %v48_v20 = vld [vmem:[%s4502_s0 + $0x28] sm:$0xff] }
  0x25   :  { %2907 = vmatpush3.bf16.msra.mxu1 %v3230_v10 }
  0x26   :  { %2908 = vmatprep.subr.bf16.mxu1 %v3231_v11 }
  0x27   :  { %760 = vmatpush1.bf16.msra.mxu0 %v3082_v21  ;;  %v3149_v21 = vld [vmem:[%s4504_s2 + $0x200] ss:$8 sps:$4 sm:$0xff]  }
  0x28   :  { %761 = vmatprep.subr.bf16.mxu0 %v3083_v22  ;;  %v165_v22 = vpack.c.bf16 %v45_v18, %v45_v18 }
  0x29   :  { %2909 = vmatpush3.bf16.msra.mxu1 %v3232_v14 }
  0x2b   :  { %762 = vmatpush1.bf16.msra.mxu0 %v3085_v23  ;;  %v3154_v23 = vld [vmem:[%s4504_s2 + $0x214] ss:$8 sps:$4 sm:$0xff]  }
  0x2c   :  { %763 = vmatprep.subr.bf16.mxu0 %v3086_v24  ;;  %v168_v24 = vpack.c.bf16 %v48_v20, %v48_v20 }
  0x2f   :  { %764 = vmatpush1.bf16.msra.mxu0 %v3088_v25  ;;  %v3152_v25 = vld [vmem:[%s4504_s2 + $0x210] ss:$8 sps:$4 sm:$0xff]  }
  0x30   :  { %765 = vmatprep.subr.bf16.mxu0 %v3089_v26  ;;  %v3157_v26 = vld [vmem:[%s4504_s2 + $0x224] ss:$8 sps:$4 sm:$0xff]  }
  0x33   :  { %766 = vmatpush1.bf16.msra.mxu0 %v3091_v27  ;;  %v3155_v27 = vld [vmem:[%s4504_s2 + $0x220] ss:$8 sps:$4 sm:$0xff]  }
  0x34   :  { %767 = vmatprep.subr.bf16.mxu0 %v3092_v28  ;;  %v3160_v28 = vld [vmem:[%s4504_s2 + $0x234] ss:$8 sps:$4 sm:$0xff]  }
  0x37   :  { %768 = vmatpush1.bf16.msra.mxu0 %v3094_v29  ;;  %v3158_v29 = vld [vmem:[%s4504_s2 + $0x230] ss:$8 sps:$4 sm:$0xff]  }
  0x38   :  { %769 = vmatprep.subr.bf16.mxu0 %v3095_v30  ;;  %v3163_v30 = vld [vmem:[%s4504_s2 + $0x244] ss:$8 sps:$4 sm:$0xff]  }
  0x3b   :  { %770 = vmatpush1.bf16.msra.mxu0 %v3097_v31  ;;  %v3161_v31 = vld [vmem:[%s4504_s2 + $0x240] ss:$8 sps:$4 sm:$0xff]  }
  0x3c   :  { %771 = vmatprep.subr.bf16.mxu0 %v3098_v32  ;;  %v3166_v32 = vld [vmem:[%s4504_s2 + $0x254] ss:$8 sps:$4 sm:$0xff]  }
  0x3f   :  { %772 = vmatpush1.bf16.msra.mxu0 %v3100_v33  ;;  %v3164_v33 = vld [vmem:[%s4504_s2 + $0x250] ss:$8 sps:$4 sm:$0xff]  }
  0x40   :  { %782 = vmatprep.subr.bf16.mxu0 %v3103_v34  ;;  %v3169_v34 = vld [vmem:[%s4504_s2 + $0x264] ss:$8 sps:$4 sm:$0xff]  }
  0x42   :  { %774 = vmatmul.mubr.bf16.vlgmr.msra.gmra.mrb[0].mxu0 %v163_v37 }
  0x43   :  { %783 = vmatpush1.bf16.msra.mxu0 %v3101_v38  ;;  %814 = vmatprep.mubr.bf16.mxu0 %v166_v39 }
  0x44   :  { %784 = vmatprep.subr.bf16.mxu0 %v3106_v40 }
  0x47   :  { %785 = vmatpush1.bf16.msra.mxu0 %v3104_v41 }
  0x48   :  { %786 = vmatprep.subr.bf16.mxu0 %v3109_v42 }
  0x4b   :  { %787 = vmatpush1.bf16.msra.mxu0 %v3107_v43 }
  0x4c   :  { %788 = vmatprep.subr.bf16.mxu0 %v3112_v44 }
  0x4f   :  { %789 = vmatpush1.bf16.msra.mxu0 %v3110_v45 }
  0x50   :  { %790 = vmatprep.subr.bf16.mxu0 %v3115_v46 }
  0x53   :  { %791 = vmatpush1.bf16.msra.mxu0 %v3113_v47 }
  0x54   :  { %792 = vmatprep.subr.bf16.mxu0 %v3118_v48 }
  0x57   :  { %793 = vmatpush1.bf16.msra.mxu0 %v3116_v49 }
  0x58   :  { %794 = vmatprep.subr.bf16.mxu0 %v3121_v50 }
  0x5b   :  { %795 = vmatpush1.bf16.msra.mxu0 %v3119_v51 }
  0x5c   :  { %796 = vmatprep.subr.bf16.mxu0 %v3124_v52 }
  0x5f   :  { %797 = vmatpush1.bf16.msra.mxu0 %v3122_v53 }
  0x60   :  { %798 = vmatprep.subr.bf16.mxu0 %v3127_v54 }
  0x63   :  { %799 = vmatpush1.bf16.msra.mxu0 %v3125_v55 }
  0x64   :  { %800 = vmatprep.subr.bf16.mxu0 %v3130_v56 }
  0x67   :  { %801 = vmatpush1.bf16.msra.mxu0 %v3128_v60 }
  0x68   :  { %802 = vmatprep.subr.bf16.mxu0 %v3133_v61 }
  0x6b   :  { %803 = vmatpush1.bf16.msra.mxu0 %v3131_v62 }
  0x6c   :  { %804 = vmatprep.subr.bf16.mxu0 %v3136_v0 }
  0x6f   :  { %805 = vmatpush1.bf16.msra.mxu0 %v3134_v4 }
  0x70   :  { %806 = vmatprep.subr.bf16.mxu0 %v3139_v5 }
  0x73   :  { %807 = vmatpush1.bf16.msra.mxu0 %v3137_v8 }
  0x74   :  { %808 = vmatprep.subr.bf16.mxu0 %v3142_v9 }
  0x77   :  { %809 = vmatpush1.bf16.msra.mxu0 %v3140_v12 }
  0x78   :  { %810 = vmatprep.subr.bf16.mxu0 %v3145_v13 }
  0x7b   :  { %811 = vmatpush1.bf16.msra.mxu0 %v3143_v15 }
  0x7c   :  { %812 = vmatprep.subr.bf16.mxu0 %v3148_v16 }
  0x7f   :  { %813 = vmatpush1.bf16.msra.mxu0 %v3146_v17 }
  0x80   :  { %823 = vmatprep.subr.bf16.mxu0 %v3151_v19 }
  0x82   :  { %815 = vmatmul.mubr.bf16.vlgmr.msra.gmra.mrb[0].mxu0 %v165_v22 }
  0x83   :  { %824 = vmatpush1.bf16.msra.mxu0 %v3149_v21  ;;  %855 = vmatprep.mubr.bf16.mxu0 %v168_v24 }
  0x84   :  { %825 = vmatprep.subr.bf16.mxu0 %v3154_v23 }
  0x87   :  { %826 = vmatpush1.bf16.msra.mxu0 %v3152_v25 }
  0x88   :  { %827 = vmatprep.subr.bf16.mxu0 %v3157_v26 }
  0x8b   :  { %828 = vmatpush1.bf16.msra.mxu0 %v3155_v27 }
  0x8c   :  { %829 = vmatprep.subr.bf16.mxu0 %v3160_v28 }
  0x8f   :  { %830 = vmatpush1.bf16.msra.mxu0 %v3158_v29 }
  0x90   :  { %831 = vmatprep.subr.bf16.mxu0 %v3163_v30 }
  0x93   :  { %832 = vmatpush1.bf16.msra.mxu0 %v3161_v31 }
  0x94   :  { %833 = vmatprep.subr.bf16.mxu0 %v3166_v32 }
  0x97   :  { %834 = vmatpush1.bf16.msra.mxu0 %v3164_v33 }
  0x98   :  { %835 = vmatprep.subr.bf16.mxu0 %v3169_v34 }
  0x99   :  { %17 = vsyncpa [#allocation3], 0  ;;  %v3170_v37 = vld [vmem:[%s4504_s2 + $0x270] ss:$8 sps:$4 sm:$0xff]   ;;  %v3175_v38 = vld [vmem:[%s4504_s2 + $0x284] ss:$8 sps:$4 sm:$0xff]   ;;  %v171_v16 = vlaneseq }
  0x9a   :  { %v3173_v39 = vld [vmem:[%s4504_s2 + $0x280] ss:$8 sps:$4 sm:$0xff]   ;;  %v3178_v40 = vld [vmem:[%s4504_s2 + $0x294] ss:$8 sps:$4 sm:$0xff]   ;;  %v3176_v41 = vld [vmem:[%s4504_s2 + $0x290] ss:$8 sps:$4 sm:$0xff]  }
  0x9b   :  { %836 = vmatpush1.bf16.msra.mxu0 %v3167_v35  ;;  %v3181_v42 = vld [vmem:[%s4504_s2 + $0x2a4] ss:$8 sps:$4 sm:$0xff]   ;;  %v3179_v43 = vld [vmem:[%s4504_s2 + $0x2a0] ss:$8 sps:$4 sm:$0xff]   ;;  %v3184_v44 = vld [vmem:[%s4504_s2 + $0x2b4] ss:$8 sps:$4 sm:$0xff]  }
  0x9c   :  { %837 = vmatprep.subr.bf16.mxu0 %v3172_v36  ;;  %v3182_v45 = vld [vmem:[%s4504_s2 + $0x2b0] ss:$8 sps:$4 sm:$0xff]   ;;  %v3187_v46 = vld [vmem:[%s4504_s2 + $0x2c4] ss:$8 sps:$4 sm:$0xff]   ;;  %v3185_v47 = vld [vmem:[%s4504_s2 + $0x2c0] ss:$8 sps:$4 sm:$0xff]  }
  0x9d   :  { %v3190_v48 = vld [vmem:[%s4504_s2 + $0x2d4] ss:$8 sps:$4 sm:$0xff]   ;;  %v3188_v49 = vld [vmem:[%s4504_s2 + $0x2d0] ss:$8 sps:$4 sm:$0xff]   ;;  %v3193_v50 = vld [vmem:[%s4504_s2 + $0x2e4] ss:$8 sps:$4 sm:$0xff]  }
  0x9e   :  { %v3191_v51 = vld [vmem:[%s4504_s2 + $0x2e0] ss:$8 sps:$4 sm:$0xff]   ;;  %v3196_v52 = vld [vmem:[%s4504_s2 + $0x2f4] ss:$8 sps:$4 sm:$0xff]   ;;  %v3194_v53 = vld [vmem:[%s4504_s2 + $0x2f0] ss:$8 sps:$4 sm:$0xff]  }
  0x9f   :  { %838 = vmatpush1.bf16.msra.mxu0 %v3170_v37  ;;  %v47_v54 = vld [vmem:[%s4502_s0 + $0x20] sm:$0xff]  ;;  %v3202_v58 = vld [vmem:[%s4504_s2 + $0x314] ss:$8 sps:$4 sm:$0xff]   ;;  %v3200_v59 = vld [vmem:[%s4504_s2 + $0x310] ss:$8 sps:$4 sm:$0xff]   ;;  %v3466_v60 = vmov 0  }
  0xa0   :  { %839 = vmatprep.subr.bf16.mxu0 %v3175_v38  ;;  %v3199_v55 = vld [vmem:[%s4504_s2 + $0x304] ss:$8 sps:$4 sm:$0xff]   ;;  %v167_v56 = vpack.c.bf16 %v47_v54, %v47_v54  ;;  %v3197_v57 = vld [vmem:[%s4504_s2 + $0x300] ss:$8 sps:$4 sm:$0xff]   ;;  %v3208_v63 = vld [vmem:[%s4504_s2 + $0x334] ss:$8 sps:$4 sm:$0xff]  }
  0xa1   :  { %v3205_v61 = vld [vmem:[%s4504_s2 + $0x324] ss:$8 sps:$4 sm:$0xff]   ;;  %v3203_v62 = vld [vmem:[%s4504_s2 + $0x320] ss:$8 sps:$4 sm:$0xff]   ;;  %v3206_v0 = vld [vmem:[%s4504_s2 + $0x330] ss:$8 sps:$4 sm:$0xff]  }
  0xa2   :  { %v3211_v1 = vld [vmem:[%s4504_s2 + $0x344] ss:$8 sps:$4 sm:$0xff]   ;;  %v3209_v2 = vld [vmem:[%s4504_s2 + $0x340] ss:$8 sps:$4 sm:$0xff]   ;;  %v3214_v3 = vld [vmem:[%s4504_s2 + $0x354] ss:$8 sps:$4 sm:$0xff]  }
  0xa3   :  { %840 = vmatpush1.bf16.msra.mxu0 %v3173_v39  ;;  %v3212_v4 = vld [vmem:[%s4504_s2 + $0x350] ss:$8 sps:$4 sm:$0xff]   ;;  %v3217_v5 = vld [vmem:[%s4504_s2 + $0x364] ss:$8 sps:$4 sm:$0xff]   ;;  %v3215_v6 = vld [vmem:[%s4504_s2 + $0x360] ss:$8 sps:$4 sm:$0xff]  }
  0xa4   :  { %841 = vmatprep.subr.bf16.mxu0 %v3178_v40  ;;  %v3220_v7 = vld [vmem:[%s4504_s2 + $0x374] ss:$8 sps:$4 sm:$0xff]   ;;  %v3218_v8 = vld [vmem:[%s4504_s2 + $0x370] ss:$8 sps:$4 sm:$0xff]   ;;  %v3467_v15 = vmov 0.0   ;;  %v3943_v17 = vshrl.u32 %v171_v16, 7 }
  0xa5   :  { %v49_v9 = vld [vmem:[%s4502_s0 + $0x30] sm:$0xff]  ;;  %v3235_v13 = vld [vmem:[%s4505_s3 + $0x78] sm:$0xff]   ;;  %v162_v19 = vld [vmem:[%s4503_s1] ss:$8 sm:$0x3]  ;;  %vm3468_vm0 = vmmov 0  }
  0xa6   :  { %v169_v10 = vpack.c.bf16 %v49_v9, %v49_v9  ;;  %v3233_v11 = vld [vmem:[%s4505_s3 + $0x70] sm:$0xff]   ;;  %v3236_v14 = vld [vmem:[%s4505_s3 + $0x38] sm:$0xff]   ;;  %v3946_v18 = vsub.s32 0, %v3943_v17  ;;  %v3952_v20 = vsub.s32 1, %v3943_v17  ;;  %v3237_v32 = vld [vmem:[%s4506_s4] sm:$0xff]   ;;  %vm1220_vm1 = vcmask 523264  }
  0xa7   :  { %842 = vmatpush1.bf16.msra.mxu0 %v3176_v41  ;;  %v3234_v12 = vld [vmem:[%s4505_s3 + $0x30] sm:$0xff]   ;;  %2910 = vmatprep.subr.bf16.mxu1 %v3233_v11  ;;  %v3238_v34 = vld [vmem:[%s4506_s4 + $0x8] sm:$0xff]   ;;  %v3240_v36 = vld [vmem:[%s4506_s4 + $0x18] sm:$0xff]   ;;  %vm1283_vm2 = vcmask 261120   ;;  %vm1338_vm3 = vcmask 130048  }
  0xa8   :  { %843 = vmatprep.subr.bf16.mxu0 %v3181_v42  ;;  %2911 = vmatpush3.bf16.msra.mxu1 %v3234_v12  ;;  %v174_v21 = vrot.slane %v162_v19, %v3946_v18  ;;  %v178_v22 = vrot.slane %v162_v19, %v3952_v20  ;;  %v3239_v35 = vld [vmem:[%s4506_s4 + $0x10] sm:$0xff]   ;;  %v3241_v37 = vld [vmem:[%s4506_s4 + $0x20] sm:$0xff]   ;;  %v3242_v38 = vld [vmem:[%s4506_s4 + $0x28] sm:$0xff]  }
  0xa9   :  { %2912 = vmatprep.subr.bf16.mxu1 %v3235_v13  ;;  %v3243_v39 = vld [vmem:[%s4506_s4 + $0x30] sm:$0xff]   ;;  %v3244_v40 = vld [vmem:[%s4506_s4 + $0x38] sm:$0xff]   ;;  %v3245_v41 = vld [vmem:[%s4507_s5] sm:$0xff]  }
  0xaa   :  { %v3246_v42 = vld [vmem:[%s4507_s5 + $0x8] sm:$0xff]   ;;  %v3249_v54 = vld [vmem:[%s4508_s6] sm:$0xff]  }
  0xab   :  { %844 = vmatpush1.bf16.msra.mxu0 %v3179_v43 }
  0xac   :  { %845 = vmatprep.subr.bf16.mxu0 %v3184_v44  ;;  %2913 = vmatpush3.bf16.msra.mxu1 %v3236_v14  ;;  %v939_v44 = vld [vmem:[%s4503_s1 + $0x1] ss:$0 sm:$0xff] }
  0xad   :  { %2969 = vmatprep.subr.bf16.mxu1 %v3467_v15 }
  0xaf   :  { %846 = vmatpush1.bf16.msra.mxu0 %v3182_v45 }
  0xb0   :  { %847 = vmatprep.subr.bf16.mxu0 %v3187_v46 }
  0xb3   :  { %848 = vmatpush1.bf16.msra.mxu0 %v3185_v47 }
  0xb4   :  { %849 = vmatprep.subr.bf16.mxu0 %v3190_v48 }
  0xb7   :  { %850 = vmatpush1.bf16.msra.mxu0 %v3188_v49 }
  0xb8   :  { %851 = vmatprep.subr.bf16.mxu0 %v3193_v50 }
  0xbb   :  { %852 = vmatpush1.bf16.msra.mxu0 %v3191_v51 }
  0xbc   :  { %853 = vmatprep.subr.bf16.mxu0 %v3196_v52  ;;  %v3247_v52 = vld [vmem:[%s4507_s5 + $0x10] sm:$0xff]  }
  0xbf   :  { %854 = vmatpush1.bf16.msra.mxu0 %v3194_v53  ;;  %v3248_v53 = vld [vmem:[%s4507_s5 + $0x18] sm:$0xff]  }
  0xc0   :  { %864 = vmatprep.subr.bf16.mxu0 %v3199_v55  ;;  %v1095_v55 = vld [vmem:[%s4503_s1 + $0x2] ss:$0 sm:$0xff] }
  0xc2   :  { %856 = vmatmul.mubr.bf16.vlgmr.msra.gmra.mrb[0].mxu0 %v167_v56 }
  0xc3   :  { %865 = vmatpush1.bf16.msra.mxu0 %v3197_v57  ;;  %896 = vmatprep.mubr.bf16.mxu0 %v3466_v60 }
  0xc4   :  { %866 = vmatprep.subr.bf16.mxu0 %v3202_v58 }
  0xc7   :  { %867 = vmatpush1.bf16.msra.mxu0 %v3200_v59 }
  0xc8   :  { %868 = vmatprep.subr.bf16.mxu0 %v3205_v61 }
  0xcb   :  { %869 = vmatpush1.bf16.msra.mxu0 %v3203_v62 }
  0xcc   :  { %870 = vmatprep.subr.bf16.mxu0 %v3208_v63 }
  0xcf   :  { %871 = vmatpush1.bf16.msra.mxu0 %v3206_v0  ;;  %v3250_v0 = vld [vmem:[%s4508_s6 + $0x8] sm:$0xff]  }
  0xd0   :  { %872 = vmatprep.subr.bf16.mxu0 %v3211_v1  ;;  %v1194_v1 = vld [vmem:[%s4503_s1 + $0x3] ss:$0 sm:$0xff] }
  0xd3   :  { %873 = vmatpush1.bf16.msra.mxu0 %v3209_v2 }
  0xd4   :  { %874 = vmatprep.subr.bf16.mxu0 %v3214_v3 }
  0xd7   :  { %875 = vmatpush1.bf16.msra.mxu0 %v3212_v4 }
  0xd8   :  { %876 = vmatprep.subr.bf16.mxu0 %v3217_v5 }
  0xdb   :  { %877 = vmatpush1.bf16.msra.mxu0 %v3215_v6 }
  0xdc   :  { %878 = vmatprep.subr.bf16.mxu0 %v3220_v7 }
  0xdf   :  { %879 = vmatpush1.bf16.msra.mxu0 %v3218_v8  ;;  %v3251_v8 = vld [vmem:[%s4509_s7] sm:$0xff]  }
  0xe0   :  { %2989 = vmatprep.subr.bf16.mxu0 %v3467_v15 }
  0xe2   :  { %897 = vmatmul.mubr.bf16.vlgmr.msra.gmra.mrb[0].mxu0 %v169_v10  ;;  %v1269_v10 = vld [vmem:[%s4503_s1 + $0x4] ss:$0 sm:$0xff] }
  0xe3   :  { %2997 = vmatprep.mubr.msk.bf16.mxu0 %vm3468_vm0, %v3467_v15  ;;  %2990 = vmatpush3.bf16.msra.mxu0 %v3245_v41 }
  0xe4   :  { %2991 = vmatprep.subr.bf16.mxu0 %v3467_v15 }
  0xe7   :  { %2992 = vmatpush3.bf16.msra.mxu0 %v3246_v42 }
  0xe8   :  { %2993 = vmatprep.subr.bf16.mxu0 %v3467_v15 }
  0xeb   :  { %2994 = vmatpush3.bf16.msra.mxu0 %v3247_v52  ;;  %v3275_v52 = vld [vmem:[%s4512_s10 + $0x54] ss:$8 sps:$4 sm:$0xff]  }
  0xec   :  { %2995 = vmatprep.subr.bf16.mxu0 %v3467_v15 }
  0xef   :  { %2996 = vmatpush3.bf16.msra.mxu0 %v3248_v53  ;;  %v3273_v53 = vld [vmem:[%s4512_s10 + $0x50] ss:$8 sps:$4 sm:$0xff]  }
 0x1b5   :  { %v898_v23 = vpop.f32.mrb[0].mxu0 }
 0x1b6   :  { %v3035_v24 = vadd.f32 %v898_v23, %v174_v21  ;;  %v900_v25 = vpop.f32.mrb[1].mxu0  ;;  %v3252_v21 = vld [vmem:[%s4510_s8] sm:$0xff]   ;;  %v3253_v23 = vld [vmem:[%s4510_s8 + $0x8] sm:$0xff]  }
 0x1b7   :  { %v3036_v26 = vadd.f32 %v900_v25, %v178_v22  ;;  %v902_v27 = vpop.f32.mrb[2].mxu0 }
 0x1b8   :  { %v905_v28 = vmax.f32 %v3035_v24, 0.0  ;;  %v903_v29 = vpop.f32.mrb[3].mxu0  ;;  %v1330_v24 = vld [vmem:[%s4503_s1 + $0x5] ss:$0 sm:$0xff] }
 0x1b9   :  { %v906_v30 = vmax.f32 %v3036_v26, 0.0 }
 0x1ba   :  { %v940_v33 = vpack.c.bf16 %v905_v28, %v905_v28 }
 0x1bb   :  { %v941_v31 = vpack.c.bf16 %v906_v30, %v906_v30 }
 0x1bd   :  { %1070 = vmatprep.mubr.bf16.mxu1 %v941_v31  ;;  %v3254_v31 = vld [vmem:[%s4511_s9] sm:$0xff]  }
 0x1be   :  { %1071 = vmatmul.mubr.bf16.vlgmr.msra.gmra.mrb[0].mxu1 %v940_v33  ;;  %v3255_v33 = vld [vmem:[%s4511_s9 + $0x8] sm:$0xff]  }
 0x1bf   :  { %2970 = vmatpush3.bf16.msra.mxu1 %v3237_v32  ;;  %2985 = vmatprep.mubr.msk.bf16.mxu1 %vm3468_vm0, %v3467_v15 }
 0x1c0   :  { %2971 = vmatprep.subr.bf16.mxu1 %v3467_v15 }
 0x1c3   :  { %2972 = vmatpush3.bf16.msra.mxu1 %v3238_v34  ;;  %v3256_v34 = vld [vmem:[%s4511_s9 + $0x10] sm:$0xff]  }
 0x1c4   :  { %2973 = vmatprep.subr.bf16.mxu1 %v3467_v15 }
 0x1c7   :  { %2974 = vmatpush3.bf16.msra.mxu1 %v3239_v35  ;;  %v3257_v35 = vld [vmem:[%s4511_s9 + $0x18] sm:$0xff]  }
 0x1c8   :  { %2975 = vmatprep.subr.bf16.mxu1 %v3467_v15 }
 0x1cb   :  { %2976 = vmatpush3.bf16.msra.mxu1 %v3240_v36  ;;  %v3260_v36 = vld [vmem:[%s4512_s10 + $0x4] ss:$8 sps:$4 sm:$0xff]  }
 0x1cc   :  { %2977 = vmatprep.subr.bf16.mxu1 %v3467_v15 }
 0x1cf   :  { %2978 = vmatpush3.bf16.msra.mxu1 %v3241_v37  ;;  %v1387_v37 = vld [vmem:[%s4503_s1 + $0x6] ss:$0 sm:$0xff] }
 0x1d0   :  { %2979 = vmatprep.subr.bf16.mxu1 %v3467_v15 }
 0x1d3   :  { %2980 = vmatpush3.bf16.msra.mxu1 %v3242_v38 }
 0x1d4   :  { %2981 = vmatprep.subr.bf16.mxu1 %v3467_v15 }
 0x1d7   :  { %2982 = vmatpush3.bf16.msra.mxu1 %v3243_v39 }
 0x1d8   :  { %2983 = vmatprep.subr.bf16.mxu1 %v3467_v15 }
 0x1db   :  { %2984 = vmatpush3.bf16.msra.mxu1 %v3244_v40 }
 0x1dc   :  { %3001 = vmatprep.subr.bf16.mxu1 %v3467_v15 }
 0x291   :  { %v2914_v43 = vpop.f32.mrb[0].mxu1 }
 0x292   :  { %v2915_v45 = vpop.f32.mrb[1].mxu1 }
 0x293   :  { %v2916_v46 = vadd.f32 %v2915_v45, %v2914_v43  ;;  %v2917_v47 = vpop.f32.mrb[2].mxu1  ;;  %v3258_v43 = vld [vmem:[%s4512_s10] ss:$8 sps:$4 sm:$0xff]   ;;  %v3263_v45 = vld [vmem:[%s4512_s10 + $0x14] ss:$8 sps:$4 sm:$0xff]  }
 0x294   :  { %v2918_v48 = vpop.f32.mrb[3].mxu1  ;;  %v3266_v47 = vld [vmem:[%s4512_s10 + $0x24] ss:$8 sps:$4 sm:$0xff]  }
 0x295   :  { %v1073_v49 = vadd.f32 %v2916_v46, %v939_v44  ;;  %v3261_v46 = vld [vmem:[%s4512_s10 + $0x10] ss:$8 sps:$4 sm:$0xff]   ;;  %v3264_v48 = vld [vmem:[%s4512_s10 + $0x20] ss:$8 sps:$4 sm:$0xff]  }
 0x297   :  { %v1078_v50 = vmax.f32 %v1073_v49, 0.0  ;;  %v3269_v49 = vld [vmem:[%s4512_s10 + $0x34] ss:$8 sps:$4 sm:$0xff]  }
 0x299   :  { %v1096_v51 = vpack.c.bf16 %v1078_v50, %v1078_v50  ;;  %v3272_v50 = vld [vmem:[%s4512_s10 + $0x44] ss:$8 sps:$4 sm:$0xff]  }
 0x29b   :  { %2986 = vmatmul.mubr.bf16.vlgmr.msra.gmra.mrb[4].mxu1 %v1096_v51  ;;  %v3270_v51 = vld [vmem:[%s4512_s10 + $0x40] ss:$8 sps:$4 sm:$0xff]  }
 0x29c   :  { %3005 = vmatprep.mubr.msk.bf16.mxu1 %vm3468_vm0, %v3467_v15  ;;  %3002 = vmatpush3.bf16.msra.mxu1 %v3249_v54  ;;  %v3278_v54 = vld [vmem:[%s4512_s10 + $0x64] ss:$8 sps:$4 sm:$0xff]  }
 0x29d   :  { %3003 = vmatprep.subr.bf16.mxu1 %v3467_v15 }
 0x2a0   :  { %3004 = vmatpush3.bf16.msra.mxu1 %v3250_v0  ;;  %v3297_v0 = vld [vmem:[%s4513_s11 + $0x80] ss:$28 sps:$4 sm:$0xff]  }
 0x2a1   :  { %3009 = vmatprep.subr.bf16.mxu1 %v3467_v15 }
 0x36e   :  { %v1179_v56 = vpop.f32.mrb[4].mxu1 }
 0x36f   :  { %v1180_v57 = vadd.f32 %v1179_v56, %v1095_v55  ;;  %v2987_v58 = vpop.f32.mrb[5].mxu1  ;;  %v3276_v55 = vld [vmem:[%s4512_s10 + $0x60] ss:$8 sps:$4 sm:$0xff]   ;;  %v3281_v56 = vld [vmem:[%s4512_s10 + $0x74] ss:$8 sps:$4 sm:$0xff]  }
 0x370   :  { %v1182_v59 = vpop.f32.mrb[6].mxu1  ;;  %v3284_v58 = vld [vmem:[%s4513_s11 + $0x4] ss:$28 sps:$4 sm:$0xff]  }
 0x371   :  { %v1185_v61 = vmax.f32 %v1180_v57, 0.0  ;;  %v2988_v62 = vpop.f32.mrb[7].mxu1  ;;  %v3279_v57 = vld [vmem:[%s4512_s10 + $0x70] ss:$8 sps:$4 sm:$0xff]  }
 0x372   :  { %v3285_v59 = vld [vmem:[%s4513_s11 + $0x10] ss:$28 sps:$4 sm:$0xff]   ;;  %v3291_v62 = vld [vmem:[%s4513_s11 + $0x48] ss:$28 sps:$4 sm:$0xff]  }
 0x373   :  { %v1195_v63 = vpack.c.bf16 %v1185_v61, %v1185_v61  ;;  %v3287_v61 = vld [vmem:[%s4513_s11 + $0x14] ss:$28 sps:$4 sm:$0xff]  }
 0x374   :  { %2504 = vmatprep.subr.bf16.mxu0 %v3287_v61  ;;  %v3360_v61 = vld [vmem:[%s4513_s11 + $0x2d8] ss:$28 sps:$4 sm:$0xff]  }
 0x375   :  { %2998 = vmatmul.mubr.msk.bf16.vlgmr.msra.gmra.mrb[4].mxu0 %vm1220_vm1, %v1195_v63  ;;  %v3293_v63 = vld [vmem:[%s4513_s11 + $0x4c] ss:$28 sps:$4 sm:$0xff]  }
 0x376   :  { %2505 = vmatpush1.bf16.msra.mxu0 %v3285_v59  ;;  %v3362_v59 = vld [vmem:[%s4513_s11 + $0x2dc] ss:$28 sps:$4 sm:$0xff]  }
 0x377   :  { %2506 = vmatprep.subr.bf16.mxu0 %v3293_v63  ;;  %v3366_v63 = vld [vmem:[%s4513_s11 + $0x310] ss:$28 sps:$4 sm:$0xff]  }
 0x37a   :  { %2507 = vmatpush1.bf16.msra.mxu0 %v3291_v62  ;;  %v3368_v62 = vld [vmem:[%s4513_s11 + $0x314] ss:$28 sps:$4 sm:$0xff]  }
 0x448   :  { %v1258_v2 = vpop.f32.mrb[4].mxu0 }
 0x449   :  { %v1259_v3 = vadd.f32 %v1258_v2, %v1194_v1  ;;  %v2999_v4 = vpop.f32.mrb[5].mxu0  ;;  %v3299_v1 = vld [vmem:[%s4513_s11 + $0x84] ss:$28 sps:$4 sm:$0xff]   ;;  %v3303_v2 = vld [vmem:[%s4513_s11 + $0xb8] ss:$28 sps:$4 sm:$0xff]  }
 0x44a   :  { %v1261_v5 = vpop.f32.mrb[6].mxu0  ;;  %2508 = vmatprep.subr.bf16.mxu0 %v3299_v1  ;;  %v3309_v4 = vld [vmem:[%s4513_s11 + $0xf0] ss:$28 sps:$4 sm:$0xff]   ;;  %v3369_v1 = vld [vmem:[%s4513_s11 + $0x320] ss:$28 sps:$4 sm:$0xff]  }
 0x44b   :  { %v1264_v6 = vmax.f32 %v1259_v3, 0.0  ;;  %v3000_v7 = vpop.f32.mrb[7].mxu0  ;;  %2509 = vmatpush1.bf16.msra.mxu0 %v3297_v0  ;;  %v3305_v3 = vld [vmem:[%s4513_s11 + $0xbc] ss:$28 sps:$4 sm:$0xff]   ;;  %v3311_v5 = vld [vmem:[%s4513_s11 + $0xf4] ss:$28 sps:$4 sm:$0xff]  }
 0x44c   :  { %2510 = vmatprep.subr.bf16.mxu0 %v3305_v3  ;;  %v3317_v7 = vld [vmem:[%s4513_s11 + $0x12c] ss:$28 sps:$4 sm:$0xff]   ;;  %v3371_v0 = vld [vmem:[%s4513_s11 + $0x324] ss:$28 sps:$4 sm:$0xff]  }
 0x44d   :  { %v1270_v9 = vpack.c.bf16 %v1264_v6, %v1264_v6  ;;  %v3315_v6 = vld [vmem:[%s4513_s11 + $0x128] ss:$28 sps:$4 sm:$0xff]  }
 0x44e   :  { %v3372_v3 = vld [vmem:[%s4513_s11 + $0x348] ss:$28 sps:$4 sm:$0xff]  }
 0x44f   :  { %3006 = vmatmul.mubr.msk.bf16.vlgmr.msra.gmra.mrb[8].mxu1 %vm1283_vm2, %v1270_v9  ;;  %2511 = vmatpush1.bf16.msra.mxu0 %v3303_v2  ;;  %v3323_v9 = vld [vmem:[%s4513_s11 + $0x164] ss:$28 sps:$4 sm:$0xff]   ;;  %v3374_v2 = vld [vmem:[%s4513_s11 + $0x34c] ss:$28 sps:$4 sm:$0xff]  }
 0x450   :  { %3010 = vmatpush3.bf16.msra.mxu1 %v3251_v8  ;;  %3011 = vmatprep.mubr.msk.bf16.mxu1 %vm3468_vm0, %v3467_v15  ;;  %v3321_v8 = vld [vmem:[%s4513_s11 + $0x160] ss:$28 sps:$4 sm:$0xff]  }
 0x451   :  { %3015 = vmatprep.subr.bf16.mxu1 %v3467_v15  ;;  %2512 = vmatprep.subr.bf16.mxu0 %v3311_v5  ;;  %v3375_v5 = vld [vmem:[%s4513_s11 + $0x358] ss:$28 sps:$4 sm:$0xff]  }
 0x453   :  { %2513 = vmatpush1.bf16.msra.mxu0 %v3309_v4  ;;  %v3377_v4 = vld [vmem:[%s4513_s11 + $0x35c] ss:$28 sps:$4 sm:$0xff]  }
 0x454   :  { %2514 = vmatprep.subr.bf16.mxu0 %v3317_v7  ;;  %v2767_v7 = vld [vmem:[%s4503_s1 + $0x38] ss:$8 sm:$0x3] }
 0x457   :  { %2515 = vmatpush1.bf16.msra.mxu0 %v3315_v6  ;;  %v3380_v6 = vld [vmem:[%s4513_s11 + $0xc] ss:$28 sps:$4 sm:$0xff]  }
 0x458   :  { %2516 = vmatprep.subr.bf16.mxu0 %v3323_v9  ;;  %v1550_v9 = vrot.slane %v2767_v7, %v3952_v20 }
 0x45b   :  { %2517 = vmatpush1.bf16.msra.mxu0 %v3321_v8  ;;  %v1546_v8 = vrot.slane %v2767_v7, %v3946_v18  ;;  %v2785_v7 = vld [vmem:[%s4503_s1 + $0x39] ss:$8 sm:$0xf0] }
 0x522   :  { %v1321_v11 = vpop.f32.mrb[8].mxu1 }
 0x523   :  { %v1322_v12 = vadd.f32 %v1321_v11, %v1269_v10  ;;  %v3007_v13 = vpop.f32.mrb[9].mxu1  ;;  %v3327_v10 = vld [vmem:[%s4513_s11 + $0x198] ss:$28 sps:$4 sm:$0xff]  }
 0x524   :  { %v1324_v14 = vpop.f32.mrb[10].mxu1  ;;  %v3329_v11 = vld [vmem:[%s4513_s11 + $0x19c] ss:$28 sps:$4 sm:$0xff]   ;;  %v3335_v13 = vld [vmem:[%s4513_s11 + $0x1d4] ss:$28 sps:$4 sm:$0xff]  }
 0x525   :  { %v1327_v16 = vmax.f32 %v1322_v12, 0.0  ;;  %v3008_v19 = vpop.f32.mrb[11].mxu1  ;;  %2518 = vmatprep.subr.bf16.mxu0 %v3329_v11  ;;  %v3333_v12 = vld [vmem:[%s4513_s11 + $0x1d0] ss:$28 sps:$4 sm:$0xff]   ;;  %v3339_v14 = vld [vmem:[%s4513_s11 + $0x208] ss:$28 sps:$4 sm:$0xff]  }
 0x526   :  { %2519 = vmatpush1.bf16.msra.mxu0 %v3327_v10  ;;  %v3345_v19 = vld [vmem:[%s4513_s11 + $0x240] ss:$28 sps:$4 sm:$0xff]  }
 0x527   :  { %v1331_v22 = vpack.c.bf16 %v1327_v16, %v1327_v16  ;;  %2520 = vmatprep.subr.bf16.mxu0 %v3335_v13  ;;  %v3341_v16 = vld [vmem:[%s4513_s11 + $0x20c] ss:$28 sps:$4 sm:$0xff]  }
 0x529   :  { %3012 = vmatmul.mubr.msk.bf16.vlgmr.msra.gmra.mrb[12].mxu1 %vm1338_vm3, %v1331_v22  ;;  %v3351_v22 = vld [vmem:[%s4513_s11 + $0x278] ss:$28 sps:$4 sm:$0xff]  }
 0x52a   :  { %3016 = vmatpush3.bf16.msra.mxu1 %v3252_v21  ;;  %3019 = vmatprep.mubr.msk.bf16.mxu1 %vm3468_vm0, %v3467_v15  ;;  %v3347_v21 = vld [vmem:[%s4513_s11 + $0x244] ss:$28 sps:$4 sm:$0xff]  }
 0x52b   :  { %3017 = vmatprep.subr.bf16.mxu1 %v3467_v15  ;;  %2521 = vmatpush1.bf16.msra.mxu0 %v3333_v12 }
 0x52c   :  { %2522 = vmatprep.subr.bf16.mxu0 %v3341_v16 }
 0x52e   :  { %3018 = vmatpush3.bf16.msra.mxu1 %v3253_v23  ;;  %v3353_v23 = vld [vmem:[%s4513_s11 + $0x27c] ss:$28 sps:$4 sm:$0xff]  }
 0x52f   :  { %3023 = vmatprep.subr.bf16.mxu1 %v3467_v15  ;;  %2523 = vmatpush1.bf16.msra.mxu0 %v3339_v14 }
 0x530   :  { %2524 = vmatprep.subr.bf16.mxu0 %v3347_v21 }
 0x533   :  { %2525 = vmatpush1.bf16.msra.mxu0 %v3345_v19 }
 0x534   :  { %2526 = vmatprep.subr.bf16.mxu0 %v3353_v23  ;;  %v3378_v23 = vld [vmem:[%s4513_s11 + $0x8] ss:$28 sps:$4 sm:$0xff]  }
 0x537   :  { %2527 = vmatpush1.bf16.msra.mxu0 %v3351_v22 }
 0x5fc   :  { %v1376_v25 = vpop.f32.mrb[12].mxu1 }
 0x5fd   :  { %v1377_v26 = vadd.f32 %v1376_v25, %v1330_v24  ;;  %v3013_v27 = vpop.f32.mrb[13].mxu1  ;;  %v3357_v24 = vld [vmem:[%s4513_s11 + $0x2b0] ss:$28 sps:$4 sm:$0xff]  }
 0x5fe   :  { %v1379_v28 = vpop.f32.mrb[14].mxu1  ;;  %v3359_v25 = vld [vmem:[%s4513_s11 + $0x2b4] ss:$28 sps:$4 sm:$0xff]   ;;  %v3365_v27 = vld [vmem:[%s4513_s11 + $0x2ec] ss:$28 sps:$4 sm:$0xff]  }
 0x5ff   :  { %v1382_v29 = vmax.f32 %v1377_v26, 0.0  ;;  %v3014_v30 = vpop.f32.mrb[15].mxu1  ;;  %2528 = vmatprep.subr.bf16.mxu0 %v3359_v25  ;;  %v3363_v26 = vld [vmem:[%s4513_s11 + $0x2e8] ss:$28 sps:$4 sm:$0xff]  }
 0x600   :  { %2529 = vmatpush1.bf16.msra.mxu0 %v3357_v24  ;;  %v1453_v28 = vld [vmem:[%s4503_s1 + $0x7] ss:$0 sm:$0xff] }
 0x601   :  { %v1388_v32 = vpack.c.bf16 %v1382_v29, %v1382_v29  ;;  %2530 = vmatprep.subr.bf16.mxu0 %v3365_v27  ;;  %v3383_v25 = vld [vmem:[%s4513_s11 + $0x44] ss:$28 sps:$4 sm:$0xff]   ;;  %v3386_v27 = vld [vmem:[%s4513_s11 + $0x7c] ss:$28 sps:$4 sm:$0xff]  }
 0x603   :  { %3020 = vmatmul.mubr.msk.bf16.vlgmr.msra.gmra.mrb[16].mxu1 %vm1283_vm2, %v1388_v32 }
 0x604   :  { %3024 = vmatpush3.bf16.msra.mxu1 %v3254_v31  ;;  %3031 = vmatprep.mubr.msk.bf16.mxu1 %vm3468_vm0, %v3467_v15 }
 0x605   :  { %3025 = vmatprep.subr.bf16.mxu1 %v3467_v15  ;;  %2531 = vmatpush1.bf16.msra.mxu0 %v3363_v26  ;;  %v3381_v26 = vld [vmem:[%s4513_s11 + $0x40] ss:$28 sps:$4 sm:$0xff]  }
 0x606   :  { %2532 = vmatprep.subr.bf16.mxu0 %v3371_v0  ;;  %v3436_v0 = vld [vmem:[%s4513_s11 + $0x2f0] ss:$28 sps:$4 sm:$0xff]  }
 0x608   :  { %3026 = vmatpush3.bf16.msra.mxu1 %v3255_v33 }
 0x609   :  { %3027 = vmatprep.subr.bf16.mxu1 %v3467_v15  ;;  %2533 = vmatpush1.bf16.msra.mxu0 %v3369_v1  ;;  %v3437_v1 = vld [vmem:[%s4513_s11 + $0x130] ss:$28 sps:$4 sm:$0xff]  }
 0x60a   :  { %2534 = vmatprep.subr.bf16.mxu0 %v3377_v4  ;;  %v3440_v4 = vld [vmem:[%s4513_s11 + $0x360] ss:$28 sps:$4 sm:$0xff]  }
 0x60c   :  { %3028 = vmatpush3.bf16.msra.mxu1 %v3256_v34 }
 0x60d   :  { %3029 = vmatprep.subr.bf16.mxu1 %v3467_v15  ;;  %2535 = vmatpush1.bf16.msra.mxu0 %v3375_v5  ;;  %v3441_v5 = vld [vmem:[%s4513_s11 + $0x1a0] ss:$28 sps:$4 sm:$0xff]  }
 0x610   :  { %3030 = vmatpush3.bf16.msra.mxu1 %v3257_v35  ;;  %v3282_v35 = vld [vmem:[%s4513_s11] ss:$28 sps:$4 sm:$0xff]  }
 0x611   :  { %1633 = vmatprep.subr.bf16.mxu1 %v3260_v36 }
 0x6d6   :  { %v1438_v38 = vpop.f32.mrb[16].mxu1 }
 0x6d7   :  { %v1439_v39 = vadd.f32 %v1438_v38, %v1387_v37  ;;  %v3021_v40 = vpop.f32.mrb[17].mxu1  ;;  %v3290_v37 = vld [vmem:[%s4513_s11 + $0x3c] ss:$28 sps:$4 sm:$0xff]  }
 0x6d8   :  { %v1441_v41 = vpop.f32.mrb[18].mxu1  ;;  %v3288_v38 = vld [vmem:[%s4513_s11 + $0x38] ss:$28 sps:$4 sm:$0xff]   ;;  %v3294_v40 = vld [vmem:[%s4513_s11 + $0x70] ss:$28 sps:$4 sm:$0xff]  }
 0x6d9   :  { %v1444_v42 = vmax.f32 %v1439_v39, 0.0  ;;  %v3022_v15 = vpop.f32.mrb[19].mxu1  ;;  %v3296_v39 = vld [vmem:[%s4513_s11 + $0x74] ss:$28 sps:$4 sm:$0xff]   ;;  %v3302_v41 = vld [vmem:[%s4513_s11 + $0xac] ss:$28 sps:$4 sm:$0xff]  }
 0x6da   :  { %v3308_v15 = vld [vmem:[%s4513_s11 + $0xe4] ss:$28 sps:$4 sm:$0xff]  }
 0x6db   :  { %v1454_v44 = vpack.c.bf16 %v1444_v42, %v1444_v42  ;;  %v3300_v42 = vld [vmem:[%s4513_s11 + $0xa8] ss:$28 sps:$4 sm:$0xff]  }
 0x6dd   :  { %3032 = vmatmul.mubr.msk.bf16.vlgmr.msra.gmra.mrb[20].mxu1 %vm1220_vm1, %v1454_v44  ;;  %v3314_v44 = vld [vmem:[%s4513_s11 + $0x11c] ss:$28 sps:$4 sm:$0xff]  }
 0x6de   :  { %1634 = vmatpush1.bf16.msra.mxu1 %v3258_v43  ;;  %1665 = vmatprep.mubr.bf16.mxu1 %v3466_v60  ;;  %v3267_v60 = vld [vmem:[%s4512_s10 + $0x30] ss:$8 sps:$4 sm:$0xff]   ;;  %v3306_v43 = vld [vmem:[%s4513_s11 + $0xe0] ss:$28 sps:$4 sm:$0xff]  }
 0x6df   :  { %1635 = vmatprep.subr.bf16.mxu1 %v3263_v45  ;;  %v3312_v45 = vld [vmem:[%s4513_s11 + $0x118] ss:$28 sps:$4 sm:$0xff]  }
 0x6e2   :  { %1636 = vmatpush1.bf16.msra.mxu1 %v3261_v46  ;;  %v3320_v46 = vld [vmem:[%s4513_s11 + $0x154] ss:$28 sps:$4 sm:$0xff]  }
 0x6e3   :  { %1637 = vmatprep.subr.bf16.mxu1 %v3266_v47  ;;  %v3318_v47 = vld [vmem:[%s4513_s11 + $0x150] ss:$28 sps:$4 sm:$0xff]  }
 0x6e6   :  { %1638 = vmatpush1.bf16.msra.mxu1 %v3264_v48  ;;  %v3326_v48 = vld [vmem:[%s4513_s11 + $0x18c] ss:$28 sps:$4 sm:$0xff]  }
 0x6e7   :  { %1639 = vmatprep.subr.bf16.mxu1 %v3269_v49  ;;  %v3324_v49 = vld [vmem:[%s4513_s11 + $0x188] ss:$28 sps:$4 sm:$0xff]  }
 0x6ea   :  { %1640 = vmatpush1.bf16.msra.mxu1 %v3267_v60  ;;  %v3332_v60 = vld [vmem:[%s4513_s11 + $0x1c4] ss:$28 sps:$4 sm:$0xff]  }
 0x6eb   :  { %1641 = vmatprep.subr.bf16.mxu1 %v3272_v50  ;;  %v3330_v50 = vld [vmem:[%s4513_s11 + $0x1c0] ss:$28 sps:$4 sm:$0xff]  }
 0x6ee   :  { %1642 = vmatpush1.bf16.msra.mxu1 %v3270_v51  ;;  %v3338_v51 = vld [vmem:[%s4513_s11 + $0x1fc] ss:$28 sps:$4 sm:$0xff]  }
 0x6ef   :  { %1643 = vmatprep.subr.bf16.mxu1 %v3275_v52  ;;  %v3336_v52 = vld [vmem:[%s4513_s11 + $0x1f8] ss:$28 sps:$4 sm:$0xff]  }
 0x6f2   :  { %1644 = vmatpush1.bf16.msra.mxu1 %v3273_v53  ;;  %v3344_v53 = vld [vmem:[%s4513_s11 + $0x234] ss:$28 sps:$4 sm:$0xff]  }
 0x6f3   :  { %1645 = vmatprep.subr.bf16.mxu1 %v3278_v54  ;;  %v3342_v54 = vld [vmem:[%s4513_s11 + $0x230] ss:$28 sps:$4 sm:$0xff]  }
 0x6f6   :  { %1646 = vmatpush1.bf16.msra.mxu1 %v3276_v55  ;;  %v3350_v55 = vld [vmem:[%s4513_s11 + $0x26c] ss:$28 sps:$4 sm:$0xff]  }
 0x6f7   :  { %1647 = vmatprep.subr.bf16.mxu1 %v3281_v56  ;;  %v3348_v56 = vld [vmem:[%s4513_s11 + $0x268] ss:$28 sps:$4 sm:$0xff]  }
 0x6fa   :  { %1648 = vmatpush1.bf16.msra.mxu1 %v3279_v57  ;;  %v3356_v57 = vld [vmem:[%s4513_s11 + $0x2a4] ss:$28 sps:$4 sm:$0xff]  }
 0x6fb   :  { %2422 = vmatprep.subr.bf16.mxu1 %v3284_v58  ;;  %v3354_v58 = vld [vmem:[%s4513_s11 + $0x2a0] ss:$28 sps:$4 sm:$0xff]  }
 0x7b0   :  { %v1516_v29 = vpop.f32.mrb[20].mxu1 }
 0x7b1   :  { %v1517_v30 = vadd.f32 %v1516_v29, %v1453_v28  ;;  %v3033_v31 = vpop.f32.mrb[21].mxu1  ;;  %v3384_v28 = vld [vmem:[%s4513_s11 + $0x78] ss:$28 sps:$4 sm:$0xff]  }
 0x7b2   :  { %v1519_v32 = vpop.f32.mrb[22].mxu1  ;;  %v3389_v29 = vld [vmem:[%s4513_s11 + $0xb4] ss:$28 sps:$4 sm:$0xff]   ;;  %v3392_v31 = vld [vmem:[%s4513_s11 + $0xec] ss:$28 sps:$4 sm:$0xff]  }
 0x7b3   :  { %v1522_v33 = vmax.f32 %v1517_v30, 0.0  ;;  %v3034_v34 = vpop.f32.mrb[23].mxu1  ;;  %v3387_v30 = vld [vmem:[%s4513_s11 + $0xb0] ss:$28 sps:$4 sm:$0xff]   ;;  %v3390_v32 = vld [vmem:[%s4513_s11 + $0xe8] ss:$28 sps:$4 sm:$0xff]  }
 0x7b4   :  { %v3393_v34 = vld [vmem:[%s4513_s11 + $0x120] ss:$28 sps:$4 sm:$0xff]  }
 0x7b5   :  { %v1541_v36 = vpack.c.bf16 %v1522_v33, %v1522_v33  ;;  %v3395_v33 = vld [vmem:[%s4513_s11 + $0x124] ss:$28 sps:$4 sm:$0xff]  }
 0x7b7   :  { %1666 = vmatmul.mubr.bf16.vlgmr.msra.gmra.mrb[24].mxu1 %v1541_v36  ;;  %v3396_v36 = vld [vmem:[%s4513_s11 + $0x158] ss:$28 sps:$4 sm:$0xff]  }
 0x7b8   :  { %2423 = vmatpush1.bf16.msra.mxu1 %v3282_v35  ;;  %v3398_v35 = vld [vmem:[%s4513_s11 + $0x15c] ss:$28 sps:$4 sm:$0xff]  }
 0x7b9   :  { %2424 = vmatprep.subr.bf16.mxu1 %v3290_v37  ;;  %v3401_v37 = vld [vmem:[%s4513_s11 + $0x194] ss:$28 sps:$4 sm:$0xff]  }
 0x7bc   :  { %2425 = vmatpush1.bf16.msra.mxu1 %v3288_v38  ;;  %v3399_v38 = vld [vmem:[%s4513_s11 + $0x190] ss:$28 sps:$4 sm:$0xff]  }
 0x7bd   :  { %2426 = vmatprep.subr.bf16.mxu1 %v3296_v39  ;;  %v3404_v39 = vld [vmem:[%s4513_s11 + $0x1cc] ss:$28 sps:$4 sm:$0xff]  }
 0x7c0   :  { %2427 = vmatpush1.bf16.msra.mxu1 %v3294_v40  ;;  %v3402_v40 = vld [vmem:[%s4513_s11 + $0x1c8] ss:$28 sps:$4 sm:$0xff]  }
 0x7c1   :  { %2428 = vmatprep.subr.bf16.mxu1 %v3302_v41  ;;  %v3407_v41 = vld [vmem:[%s4513_s11 + $0x204] ss:$28 sps:$4 sm:$0xff]  }
 0x7c4   :  { %2429 = vmatpush1.bf16.msra.mxu1 %v3300_v42  ;;  %v3405_v42 = vld [vmem:[%s4513_s11 + $0x200] ss:$28 sps:$4 sm:$0xff]  }
 0x7c5   :  { %2430 = vmatprep.subr.bf16.mxu1 %v3308_v15  ;;  %v3410_v15 = vld [vmem:[%s4513_s11 + $0x23c] ss:$28 sps:$4 sm:$0xff]  }
 0x7c8   :  { %2431 = vmatpush1.bf16.msra.mxu1 %v3306_v43  ;;  %v3408_v43 = vld [vmem:[%s4513_s11 + $0x238] ss:$28 sps:$4 sm:$0xff]  }
 0x7c9   :  { %2432 = vmatprep.subr.bf16.mxu1 %v3314_v44  ;;  %v3413_v44 = vld [vmem:[%s4513_s11 + $0x274] ss:$28 sps:$4 sm:$0xff]  }
 0x7cc   :  { %2433 = vmatpush1.bf16.msra.mxu1 %v3312_v45  ;;  %v3411_v45 = vld [vmem:[%s4513_s11 + $0x270] ss:$28 sps:$4 sm:$0xff]  }
 0x7cd   :  { %2434 = vmatprep.subr.bf16.mxu1 %v3320_v46  ;;  %v3416_v46 = vld [vmem:[%s4513_s11 + $0x2ac] ss:$28 sps:$4 sm:$0xff]  }
 0x7d0   :  { %2435 = vmatpush1.bf16.msra.mxu1 %v3318_v47  ;;  %v3414_v47 = vld [vmem:[%s4513_s11 + $0x2a8] ss:$28 sps:$4 sm:$0xff]  }
 0x7d1   :  { %2436 = vmatprep.subr.bf16.mxu1 %v3326_v48  ;;  %v3419_v48 = vld [vmem:[%s4513_s11 + $0x2e4] ss:$28 sps:$4 sm:$0xff]  }
 0x7d4   :  { %2437 = vmatpush1.bf16.msra.mxu1 %v3324_v49  ;;  %v3417_v49 = vld [vmem:[%s4513_s11 + $0x2e0] ss:$28 sps:$4 sm:$0xff]  }
 0x7d5   :  { %2438 = vmatprep.subr.bf16.mxu1 %v3332_v60  ;;  %v3422_v60 = vld [vmem:[%s4513_s11 + $0x31c] ss:$28 sps:$4 sm:$0xff]  }
 0x7d8   :  { %2439 = vmatpush1.bf16.msra.mxu1 %v3330_v50  ;;  %v3420_v50 = vld [vmem:[%s4513_s11 + $0x318] ss:$28 sps:$4 sm:$0xff]  }
 0x7d9   :  { %2440 = vmatprep.subr.bf16.mxu1 %v3338_v51  ;;  %v3425_v51 = vld [vmem:[%s4513_s11 + $0x354] ss:$28 sps:$4 sm:$0xff]  }
 0x7dc   :  { %2441 = vmatpush1.bf16.msra.mxu1 %v3336_v52  ;;  %v3423_v52 = vld [vmem:[%s4513_s11 + $0x350] ss:$28 sps:$4 sm:$0xff]  }
 0x7dd   :  { %2442 = vmatprep.subr.bf16.mxu1 %v3344_v53  ;;  %v3426_v53 = vld [vmem:[%s4513_s11 + $0x1d8] ss:$28 sps:$4 sm:$0xff]  }
 0x7e0   :  { %2443 = vmatpush1.bf16.msra.mxu1 %v3342_v54  ;;  %v3427_v54 = vld [vmem:[%s4513_s11 + $0x18] ss:$28 sps:$4 sm:$0xff]  }
 0x7e1   :  { %2444 = vmatprep.subr.bf16.mxu1 %v3350_v55  ;;  %v3428_v55 = vld [vmem:[%s4513_s11 + $0x210] ss:$28 sps:$4 sm:$0xff]  }
 0x7e4   :  { %2445 = vmatpush1.bf16.msra.mxu1 %v3348_v56  ;;  %v3429_v56 = vld [vmem:[%s4513_s11 + $0x50] ss:$28 sps:$4 sm:$0xff]  }
 0x7e5   :  { %2446 = vmatprep.subr.bf16.mxu1 %v3356_v57  ;;  %v3430_v57 = vld [vmem:[%s4513_s11 + $0x248] ss:$28 sps:$4 sm:$0xff]  }
 0x7e8   :  { %2447 = vmatpush1.bf16.msra.mxu1 %v3354_v58  ;;  %v3431_v58 = vld [vmem:[%s4513_s11 + $0x88] ss:$28 sps:$4 sm:$0xff]  }
 0x7e9   :  { %2448 = vmatprep.subr.bf16.mxu1 %v3362_v59  ;;  %v3432_v59 = vld [vmem:[%s4513_s11 + $0x280] ss:$28 sps:$4 sm:$0xff]  }
 0x7ec   :  { %2449 = vmatpush1.bf16.msra.mxu1 %v3360_v61  ;;  %v3433_v61 = vld [vmem:[%s4513_s11 + $0xc0] ss:$28 sps:$4 sm:$0xff]  }
 0x7ed   :  { %2450 = vmatprep.subr.bf16.mxu1 %v3368_v62  ;;  %v3434_v62 = vld [vmem:[%s4513_s11 + $0x2b8] ss:$28 sps:$4 sm:$0xff]  }
 0x7f0   :  { %2451 = vmatpush1.bf16.msra.mxu1 %v3366_v63  ;;  %v3435_v63 = vld [vmem:[%s4513_s11 + $0xf8] ss:$28 sps:$4 sm:$0xff]  }
 0x7f1   :  { %2452 = vmatprep.subr.bf16.mxu1 %v3374_v2  ;;  %v3438_v2 = vld [vmem:[%s4513_s11 + $0x328] ss:$28 sps:$4 sm:$0xff]  }
 0x7f4   :  { %2453 = vmatpush1.bf16.msra.mxu1 %v3372_v3  ;;  %v3439_v3 = vld [vmem:[%s4513_s11 + $0x168] ss:$28 sps:$4 sm:$0xff]  }
 0x7f5   :  { %2463 = vmatprep.subr.bf16.mxu1 %v3380_v6  ;;  %v2784_v6 = vld [vmem:[%s4503_s1 + $0x39] ss:$8 sm:$0xf]  ;;  %s3469_s1 = smov [#allocation2]  }
 0x7f6   :  { %s2605_s11 = sshll.u32 %s3469_s1, 4  ;;  %s2606_s11 = int_to_ptr.vmem [resolvable:$true] %s2605_s11 }
 0x7f7   :  { %s3442_s10 = scalar_lea.vmem %s2606_s11, 896  ;;  %p3447_p1 = scmp.lt.s32.totalorder %s2606_s11, %s2606_s11 }
 0x7f8   :  { %p3443_p0 = scmp.ne.s32.totalorder %s2606_s11, %s3442_s10  ;;  %p3448_p2 = scmp.lt.s32.totalorder %s3442_s10, %s3442_s10 }
 0x7fa   :  { %p3449_p3 = por %p3448_p2, %p3447_p1 }
 0x7fc   :  { %p3450_p4 = pnand %p3449_p3, %p3443_p0 }
 0x88a   :  { %v1667_v10 = vpop.f32.mrb[24].mxu1 }
 0x88b   :  { %v1668_v11 = vadd.f32 %v1667_v10, %v1546_v8  ;;  %v1669_v12 = vpop.f32.mrb[25].mxu1  ;;  %v1807_v8 = vor.u32 %v2785_v7, %v2784_v6  ;;  %v1833_v10 = vsub.s32 5, %v3943_v17 }
 0x88c   :  { %v1670_v13 = vadd.f32 %v1669_v12, %v1550_v9  ;;  %v1671_v14 = vpop.f32.mrb[26].mxu1  ;;  %v1829_v9 = vsub.s32 4, %v3943_v17 }
 0x88d   :  { %v1674_v16 = vmax.f32 %v1668_v11, 0.0  ;;  %v1672_v19 = vpop.f32.mrb[27].mxu1  ;;  %v1814_v11 = vrot.slane %v1807_v8, %v3946_v18  ;;  %v1834_v14 = vrot.slane %v1807_v8, %v1833_v10 }
 0x88e   :  { %v1675_v21 = vmax.f32 %v1670_v13, 0.0  ;;  %v1830_v12 = vrot.slane %v1807_v8, %v1829_v9  ;;  %v1818_v13 = vrot.slane %v1807_v8, %v3952_v20  ;;  %v1821_v20 = vsub.s32 2, %v3943_v17 }
 0x88f   :  { %v4329_v24 = vpack.c.bf16 %v1674_v16, %v1674_v16 }
 0x890   :  { %v4324_v22 = vpack.c.bf16 %v1675_v21, %v1675_v21 }
 0x892   :  { %2454 = vmatprep.mubr.bf16.mxu1 %v4324_v22  ;;  %2536 = vmatprep.mubr.bf16.mxu0 %v4324_v22 }
 0x893   :  { %2455 = vmatmul.mubr.bf16.vlgmr.msra.gmra.mrb[28].mxu1 %v4329_v24  ;;  %2537 = vmatmul.mubr.bf16.vlgmr.msra.gmra.mrb[8].mxu0 %v4329_v24 }
 0x894   :  { %2464 = vmatpush1.bf16.msra.mxu1 %v3378_v23  ;;  %2495 = vmatprep.mubr.bf16.mxu1 %v4324_v22 }
 0x895   :  { %2465 = vmatprep.subr.bf16.mxu1 %v3383_v25 }
 0x898   :  { %2466 = vmatpush1.bf16.msra.mxu1 %v3381_v26 }
 0x899   :  { %2467 = vmatprep.subr.bf16.mxu1 %v3386_v27 }
 0x89c   :  { %2468 = vmatpush1.bf16.msra.mxu1 %v3384_v28 }
 0x89d   :  { %2469 = vmatprep.subr.bf16.mxu1 %v3389_v29 }
 0x8a0   :  { %2470 = vmatpush1.bf16.msra.mxu1 %v3387_v30 }
 0x8a1   :  { %2471 = vmatprep.subr.bf16.mxu1 %v3392_v31 }
 0x8a4   :  { %2472 = vmatpush1.bf16.msra.mxu1 %v3390_v32 }
 0x8a5   :  { %2473 = vmatprep.subr.bf16.mxu1 %v3395_v33 }
 0x8a8   :  { %2474 = vmatpush1.bf16.msra.mxu1 %v3393_v34  ;;  %v1825_v34 = vsub.s32 3, %v3943_v17 }
 0x8a9   :  { %2475 = vmatprep.subr.bf16.mxu1 %v3398_v35  ;;  %v1822_v35 = vrot.slane %v1807_v8, %v1821_v20 }
 0x8ac   :  { %2476 = vmatpush1.bf16.msra.mxu1 %v3396_v36  ;;  %v1826_v36 = vrot.slane %v1807_v8, %v1825_v34 }
 0x8ad   :  { %2477 = vmatprep.subr.bf16.mxu1 %v3401_v37 }
 0x8b0   :  { %2478 = vmatpush1.bf16.msra.mxu1 %v3399_v38 }
 0x8b1   :  { %2479 = vmatprep.subr.bf16.mxu1 %v3404_v39 }
 0x8b4   :  { %2480 = vmatpush1.bf16.msra.mxu1 %v3402_v40 }
 0x8b5   :  { %2481 = vmatprep.subr.bf16.mxu1 %v3407_v41 }
 0x8b8   :  { %2482 = vmatpush1.bf16.msra.mxu1 %v3405_v42 }
 0x8b9   :  { %2483 = vmatprep.subr.bf16.mxu1 %v3410_v15 }
 0x8bc   :  { %2484 = vmatpush1.bf16.msra.mxu1 %v3408_v43 }
 0x8bd   :  { %2485 = vmatprep.subr.bf16.mxu1 %v3413_v44  ;;  %v1837_v44 = vsub.s32 6, %v3943_v17 }
 0x8c0   :  { %2486 = vmatpush1.bf16.msra.mxu1 %v3411_v45 }
 0x8c1   :  { %2487 = vmatprep.subr.bf16.mxu1 %v3416_v46  ;;  %v1838_v46 = vrot.slane %v1807_v8, %v1837_v44 }
 0x8c4   :  { %2488 = vmatpush1.bf16.msra.mxu1 %v3414_v47 }
 0x8c5   :  { %2489 = vmatprep.subr.bf16.mxu1 %v3419_v48 }
 0x8c8   :  { %2490 = vmatpush1.bf16.msra.mxu1 %v3417_v49 }
 0x8c9   :  { %2491 = vmatprep.subr.bf16.mxu1 %v3422_v60 }
 0x8cc   :  { %2492 = vmatpush1.bf16.msra.mxu1 %v3420_v50 }
 0x8cd   :  { %2493 = vmatprep.subr.bf16.mxu1 %v3425_v51 }
 0x8d0   :  { %2494 = vmatpush1.bf16.msra.mxu1 %v3423_v52 }
 0x8d1   :  { %2947 = vmatprep.subr.bf16.mxu1 %v3426_v53 }
 0x8d3   :  { %2496 = vmatmul.mubr.bf16.vlgmr.msra.gmra.mrb[32].mxu1 %v4329_v24 }
 0x8d4   :  { %2948 = vmatpush3.bf16.msra.mxu1 %v3427_v54  ;;  %2577 = vmatprep.mubr.bf16.mxu1 %v4324_v22 }
 0x8d5   :  { %2949 = vmatprep.subr.bf16.mxu1 %v3428_v55 }
 0x8d8   :  { %2950 = vmatpush3.bf16.msra.mxu1 %v3429_v56 }
 0x8d9   :  { %2951 = vmatprep.subr.bf16.mxu1 %v3430_v57 }
 0x8dc   :  { %2952 = vmatpush3.bf16.msra.mxu1 %v3431_v58 }
 0x8dd   :  { %2953 = vmatprep.subr.bf16.mxu1 %v3432_v59 }
 0x8e0   :  { %2954 = vmatpush3.bf16.msra.mxu1 %v3433_v61 }
 0x8e1   :  { %2955 = vmatprep.subr.bf16.mxu1 %v3434_v62 }
 0x8e4   :  { %2956 = vmatpush3.bf16.msra.mxu1 %v3435_v63 }
 0x8e5   :  { %2957 = vmatprep.subr.bf16.mxu1 %v3436_v0 }
 0x8e8   :  { %2958 = vmatpush3.bf16.msra.mxu1 %v3437_v1 }
 0x8e9   :  { %2959 = vmatprep.subr.bf16.mxu1 %v3438_v2 }
 0x8ec   :  { %2960 = vmatpush3.bf16.msra.mxu1 %v3439_v3 }
 0x8ed   :  { %2961 = vmatprep.subr.bf16.mxu1 %v3440_v4 }
 0x8f0   :  { %2962 = vmatpush3.bf16.msra.mxu1 %v3441_v5 }
 0x8f3   :  { %2578 = vmatmul.mubr.bf16.vlgmr.msra.gmra.mrb[36].mxu1 %v4329_v24 }
 0x966   :  { %v2456_v16 = vpop.f32.mrb[28].mxu1  ;;  %v2538_v19 = vpop.f32.mrb[8].mxu0 }
 0x967   :  { %v2457_v21 = vadd.f32 %v2456_v16, %v1814_v11  ;;  %v2539_v22 = vadd.f32 %v2538_v19, %v1830_v12  ;;  %v2458_v23 = vpop.f32.mrb[29].mxu1  ;;  %v2540_v24 = vpop.f32.mrb[9].mxu0 }
 0x968   :  { %v2459_v25 = vadd.f32 %v2458_v23, %v1818_v13  ;;  %v2541_v26 = vadd.f32 %v2540_v24, %v1834_v14  ;;  %v2460_v27 = vpop.f32.mrb[30].mxu1  ;;  %v2542_v28 = vpop.f32.mrb[10].mxu0 }
 0x969   :  { %v2585_v29 = vmax.f32 %v2457_v21, 0.0  ;;  %v2589_v30 = vmax.f32 %v2539_v22, 0.0  ;;  %v2461_v31 = vpop.f32.mrb[31].mxu1  ;;  %v2543_v32 = vpop.f32.mrb[11].mxu0 }
 0x96a   :  { %v2586_v33 = vmax.f32 %v2459_v25, 0.0  ;;  %v2590_v18 = vmax.f32 %v2541_v26, 0.0 }
 0x96b   :  { %2592 = vst [vmem:[#allocation2] sm:$0xff] %v2585_v29  ;;  %2596 = vst [vmem:[#allocation2 + $0x20] sm:$0xff] %v2589_v30 }
 0x96c   :  { %2593 = vst [vmem:[#allocation2 + $0x8] sm:$0xff] %v2586_v33  ;;  %2597 = vst [vmem:[#allocation2 + $0x28] sm:$0xff] %v2590_v18 }
 0x9a6   :  { %v2497_v37 = vpop.f32.mrb[32].mxu1 }
 0x9a7   :  { %v2498_v38 = vadd.f32 %v2497_v37, %v1822_v35  ;;  %v2499_v39 = vpop.f32.mrb[33].mxu1 }
 0x9a8   :  { %v2500_v40 = vadd.f32 %v2499_v39, %v1826_v36  ;;  %v2501_v41 = vpop.f32.mrb[34].mxu1 }
 0x9a9   :  { %v2587_v42 = vmax.f32 %v2498_v38, 0.0  ;;  %v2502_v15 = vpop.f32.mrb[35].mxu1 }
 0x9aa   :  { %v2588_v43 = vmax.f32 %v2500_v40, 0.0 }
 0x9ab   :  { %2594 = vst [vmem:[#allocation2 + $0x10] sm:$0xff] %v2587_v42 }
 0x9ac   :  { %2595 = vst [vmem:[#allocation2 + $0x18] sm:$0xff] %v2588_v43 }
 0x9c6   :  { %v2963_v45 = vpop.f32.mrb[36].mxu1 }
 0x9c7   :  { %v2964_v47 = vpop.f32.mrb[37].mxu1 }
 0x9c8   :  { %v2965_v48 = vadd.f32 %v2964_v47, %v2963_v45  ;;  %v2966_v49 = vpop.f32.mrb[38].mxu1 }
 0x9c9   :  { %v2967_v60 = vpop.f32.mrb[39].mxu1 }
 0x9ca   :  { %v2580_v50 = vadd.f32 %v2965_v48, %v1838_v46 }
 0x9cc   :  { %v2591_v51 = vmax.f32 %v2580_v50, 0.0 }
 0x9ce   :  { %2598 = vst [vmem:[#allocation2 + $0x30] sm:$0xff] %v2591_v51 }
 0x9cf   :  { %3453 = shalt.err (!%p3450_p4)
}
 0x9d0   :  { %s3454_s18 = scalar_lea.hbm %s4514_s12, 896 }
 0x9d1   :  { %p3455_p5 = scmp.ne.s32.totalorder %s4514_s12, %s3454_s18  ;;  %p3458_p6 = scmp.lt.u32.totalorder %s3454_s18, %s4514_s12 }
 0x9d3   :  { %p3460_p7 = pnand %p3458_p6, %p3455_p5 }
 0x9d5   :  { %3463 = shalt.err (!%p3460_p7)
}
 0x9d6   :  { %2608 = dma.vmem_to_hbm [thread:$0]  %s2606_s11, 896, %s4514_s12, [#allocation3]  }
 0x9d7   :  { %3464 = dma.done.wait [#allocation3], 896  }
 0x9d8   :  { %3465 = vsyncadd [#allocation3], 4294966400 }
 0x9d9   :  { %2612 = vsyncpa [#allocation3], 1 }

</bundles_post_ra>
